<compile_context>
chip_gen: v7x
topology: tpu7x:2x2x1
jax: 0.10.0
libtpu: 0.0.40
codegen_flags: <defaults>
</compile_context>

<pallas_src>
import math

import jax
import jax.numpy as jnp
from jax.experimental import pallas as pl
from jax.experimental.pallas import tpu as pltpu


# ----------------------------- Pallas kernel ------------------------------ #
def mlp_base_fused_kernel(x_ref, w1_ref, w2_ref, vec_ref, value_ref, actor_ref):
    # x_ref:     [TB, NI]   f32   (cast to bf16 in-kernel)
    # w1_ref:    [NI, 2H]   bf16  ([Wc1 | Wa1])
    # w2_ref:    [2H, 2H]   bf16  (block-diag [[Wc2, 0], [0, Wa2]])
    # vec_ref:   [8, 2H]    f32   (row0=b1, row1=b2, row2=wv(padded), row3=bv(bcast), rest 0)
    # value_ref: [TB, 1]    f32
    # actor_ref: [TB, H]    bf16
    vec = vec_ref[...]
    b1 = vec[0:1, :]
    b2 = vec[1:2, :]
    wv = vec[2:3, :]          # critic half = Wv column, actor half = 0
    bv = vec[3:4, 0:1]        # scalar bias of critic_linear

    # In-kernel f32 -> bf16 cast of the input (no wrapper pass over x).
    x = x_ref[...].astype(jnp.bfloat16)

    # Fused layer 1 (critic | actor), f32 MXU accumulation.
    h1 = jnp.tanh(jnp.dot(x, w1_ref[...], preferred_element_type=jnp.float32) + b1)

    # Fused layer 2 (block-diagonal weights keep the two trunks independent).
    h2 = jnp.tanh(
        jnp.dot(h1.astype(jnp.bfloat16), w2_ref[...], preferred_element_type=jnp.float32) + b2
    )

    # Critic head: value = hc @ Wv + bv as an elementwise mul + lane reduction
    # (actor lanes of wv are zero, so only the critic half contributes).
    value_ref[...] = jnp.sum(h2 * wv, axis=-1, keepdims=True) + bv

    # Actor hidden: lanes [H, 2H) of the fused activation, stored in bf16.
    half = h2.shape[-1] // 2
    actor_ref[...] = h2[:, half:].astype(actor_ref.dtype)


# ------------------------------- wrapper ----------------------------------- #
_SINGLE_BUFFER_WEIGHTS = None  # lazily detected support for pipeline_mode=pl.Buffered(1)


def _pick_block_b(B, max_rows=4096):
    """Batch tile choice (no padding ever):
    * >=2 grid steps when cheap, so ("parallel",) can shard the batch across v7x's two
      TensorCores (single-TC v5e/v6e only pay ~0.35 us per extra step);
    * capped at max_rows so double-buffered tiles stay far below v7x's 64 MiB/TC VMEM."""
    tb = B
    if B % 2 == 0 and (B // 2) % 16 == 0:
        tb = B // 2
    while tb > max_rows and tb % 2 == 0 and (tb // 2) % 16 == 0:
        tb //= 2
    return tb


def _weight_spec(shape, single_buffer):
    # Grid-invariant operands (constant index map): fetched once. Single-buffering drops the
    # redundant second VMEM buffer / DMA descriptors.
    if single_buffer:
        return pl.BlockSpec(shape, lambda i: (0, 0), pipeline_mode=pl.Buffered(buffer_count=1))
    return pl.BlockSpec(shape, lambda i: (0, 0))


def _build_call(B, NI, H2, block_b, single_buffer):
    H = H2 // 2
    nb = B // block_b
    return pl.pallas_call(
        mlp_base_fused_kernel,
        out_shape=(
            jax.ShapeDtypeStruct((B, 1), jnp.float32),    # value: keep f32 precision
            jax.ShapeDtypeStruct((B, H), jnp.bfloat16),   # hidden_actor: halve HBM writeback
        ),
        grid=(nb,),
        in_specs=[
            pl.BlockSpec((block_b, NI), lambda i: (i, 0)),  # x: f32, tiled over batch
            _weight_spec((NI, H2), single_buffer),          # W1 slab (resident)
            _weight_spec((H2, H2), single_buffer),          # W2 slab (resident)
            _weight_spec((8, H2), single_buffer),           # bias / head slab (resident)
        ],
        out_specs=(
            pl.BlockSpec((block_b, 1), lambda i: (i, 0)),
            pl.BlockSpec((block_b, H), lambda i: (i, 0)),
        ),
        compiler_params=pltpu.CompilerParams(
            dimension_semantics=("parallel",)               # v7x: shard batch across its 2 TCs
        ),
    )


def mlp_base_forward(x, packed, rnn_hxs=None, masks=None, *, block_b=None):
    """MLPBase forward hot path in one fused Pallas kernel.

    x:      [B, num_inputs] float32
    packed: (w1 [NI, 2H] bf16, w2 [2H, 2H] bf16, vec [8, 2H] f32) from pack_params().
    Returns (value [B, 1] f32, hidden_actor [B, H] bf16, rnn_hxs passed through).
    `masks` is unused in the non-recurrent path (matches the module).
    """
    global _SINGLE_BUFFER_WEIGHTS
    w1, w2, vec = packed
    B, NI = x.shape
    H2 = w2.shape[0]

    if block_b is None:
        block_b = _pick_block_b(B)
    if B % block_b != 0:
        block_b = B  # never pad: fall back to one full-batch tile

    args = (x, w1, w2, vec)
    if _SINGLE_BUFFER_WEIGHTS is None:
        try:
            out = _build_call(B, NI, H2, block_b, True)(*args)
            jax.block_until_ready(out)
            _SINGLE_BUFFER_WEIGHTS = True
        except Exception:
            _SINGLE_BUFFER_WEIGHTS = False
            out = _build_call(B, NI, H2, block_b, False)(*args)
    else:
        out = _build_call(B, NI, H2, block_b, _SINGLE_BUFFER_WEIGHTS)(*args)

    value, hidden_actor = out
    return value, hidden_actor, rnn_hxs


# --------------------------- parameter creation ---------------------------- #
def _orthogonal(key, rows, cols, gain):
    """Deterministic orthogonal init (same semantics as nn.init.orthogonal_)."""
    n = max(rows, cols)
    a = jax.random.normal(key, (n, n), dtype=jnp.float32)
    q, r = jnp.linalg.qr(a)
    q = q * jnp.sign(jnp.diag(r))[None, :]
    return gain * q[:rows, :cols].astype(jnp.float32)


def make_params(num_inputs, hidden_size, seed=0):
    """Weights stored as [in, out] (y = x @ W + b); orthogonal gain sqrt(2) everywhere,
    zero biases — matching the module's init_ (which uses np.sqrt(2) for critic_linear too)."""
    keys = jax.random.split(jax.random.PRNGKey(seed), 5)
    g = math.sqrt(2.0)
    z = lambda n: jnp.zeros((1, n), dtype=jnp.float32)
    return {
        # critic trunk
        "wc1": _orthogonal(keys[0], num_inputs, hidden_size, g), "bc1": z(hidden_size),
        "wc2": _orthogonal(keys[1], hidden_size, hidden_size, g), "bc2": z(hidden_size),
        # actor trunk
        "wa1": _orthogonal(keys[2], num_inputs, hidden_size, g), "ba1": z(hidden_size),
        "wa2": _orthogonal(keys[3], hidden_size, hidden_size, g), "ba2": z(hidden_size),
        # critic_linear
        "wv": _orthogonal(keys[4], hidden_size, 1, g), "bv": z(1),
    }


def pack_params(p):
    """Pack the 11 raw tensors into 3 kernel operands (bf16 weight slabs + f32 vec slab)."""
    H = p["wc2"].shape[0]
    # Layer-1 slab: [Wc1 | Wa1]  -> [NI, 2H]
    w1 = jnp.concatenate([p["wc1"], p["wa1"]], axis=1).astype(jnp.bfloat16)
    # Layer-2 slab: block-diag([[Wc2, 0], [0, Wa2]]) -> [2H, 2H]
    w2 = jnp.zeros((2 * H, 2 * H), jnp.float32)
    w2 = w2.at[:H, :H].set(p["wc2"]).at[H:, H:].set(p["wa2"]).astype(jnp.bfloat16)
    # Bias / head slab: [8, 2H] f32 (rows 4..7 padding).
    b1 = jnp.concatenate([p["bc1"], p["ba1"]], axis=1)
    b2 = jnp.concatenate([p["bc2"], p["ba2"]], axis=1)
    wv_row = jnp.concatenate([p["wv"].T, jnp.zeros((1, H), jnp.float32)], axis=1)
    bv_row = jnp.broadcast_to(p["bv"], (1, 2 * H))
    vec = jnp.concatenate(
        [b1, b2, wv_row, bv_row, jnp.zeros((4, 2 * H), jnp.float32)], axis=0
    ).astype(jnp.float32)
    return w1, w2, vec


def reference_forward(x, p):
    """Plain-JAX reference with the same bf16-weight / f32-accumulate mixed precision."""
    bf = jnp.bfloat16

    def layer(h, w, b):
        return jnp.tanh(
            jnp.dot(h.astype(bf), w.astype(bf), preferred_element_type=jnp.float32) + b
        )

    xb = x.astype(bf)
    hc = layer(layer(xb, p["wc1"], p["bc1"]), p["wc2"], p["bc2"])
    ha = layer(layer(xb, p["wa1"], p["ba1"]), p["wa2"], p["ba2"])
    value = jnp.sum(hc * p["wv"].T, axis=-1, keepdims=True) + p["bv"]
    return value, ha


# ---------------------------------- main ----------------------------------- #
if __name__ == "__main__":
    B, NUM_INPUTS, HIDDEN = 256, 32, 64

    key = jax.random.PRNGKey(0)
    x = jax.random.normal(key, (B, NUM_INPUTS), dtype=jnp.float32)
    # recurrent=False => rnn_hxs has size recurrent_hidden_state_size == 1, passed through.
    rnn_hxs = jnp.zeros((B, 1), dtype=jnp.float32)
    masks = jnp.ones((B, 1), dtype=jnp.float32)  # unused in the non-recurrent path

    params = make_params(NUM_INPUTS, HIDDEN, seed=0)
    packed = pack_params(params)

    # Auto tile: B=256 -> block_b=128 -> grid=(2,) (both v7x TensorCores active).
    value, hidden_actor, rnn_out = mlp_base_forward(x, packed, rnn_hxs, masks)
    jax.block_until_ready((value, hidden_actor))

    # Correctness check against a plain-JAX reference using the same mixed precision.
    ref_value, ref_actor = reference_forward(x, params)
    assert value.shape == (B, 1) and value.dtype == jnp.float32
    assert hidden_actor.shape == (B, HIDDEN)
    assert rnn_out is rnn_hxs
    assert jnp.allclose(value, ref_value, atol=5e-3, rtol=5e-3), float(
        jnp.max(jnp.abs(value - ref_value))
    )
    actor_f32 = hidden_actor.astype(jnp.float32)
    assert jnp.allclose(actor_f32, ref_actor, atol=1e-2, rtol=1e-2), float(
        jnp.max(jnp.abs(actor_f32 - ref_actor))
    )

    print("KERNEL_OK")
</pallas_src>

<mosaic_0001>
module attributes {stable_mosaic.version = 11 : i64} {
  func.func @mlp_base_fused_kernel(%arg0: i32, %arg1: memref<128x32xf32, #tpu.memory_space<vmem>>, %arg2: memref<32x128xbf16, #tpu.memory_space<vmem>>, %arg3: memref<128x128xbf16, #tpu.memory_space<vmem>>, %arg4: memref<8x128xf32, #tpu.memory_space<vmem>>, %arg5: memref<128x1xf32, #tpu.memory_space<vmem>>, %arg6: memref<128x64xbf16, #tpu.memory_space<vmem>>) attributes {dimension_semantics = [#tpu.dimension_semantics<parallel>], iteration_bounds = array<i64: 2>, scalar_prefetch = 0 : i64, scratch_operands = 0 : i64, tpu.core_type = #tpu.core_type<tc>, window_params = [{transform_indices = @transform_0, window_bounds = array<i64: 128, 32>}, {pipeline_mode = #tpu.pipeline_mode<synchronous>, transform_indices = @transform_1, window_bounds = array<i64: 32, 128>}, {pipeline_mode = #tpu.pipeline_mode<synchronous>, transform_indices = @transform_2, window_bounds = array<i64: 128, 128>}, {pipeline_mode = #tpu.pipeline_mode<synchronous>, transform_indices = @transform_3, window_bounds = array<i64: 8, 128>}, {transform_indices = @transform_4, window_bounds = array<i64: 128, 1>}, {transform_indices = @transform_5, window_bounds = array<i64: 128, 64>}]} {
    %c0 = arith.constant 0 : index
    %c0_0 = arith.constant 0 : index
    %0 = vector.load %arg4[%c0, %c0_0] : memref<8x128xf32, #tpu.memory_space<vmem>>, vector<8x128xf32>
    %1 = vector.extract_strided_slice %0 {offsets = [0, 0], sizes = [1, 128], strides = [1, 1]} : vector<8x128xf32> to vector<1x128xf32>
    %2 = vector.extract_strided_slice %0 {offsets = [1, 0], sizes = [1, 128], strides = [1, 1]} : vector<8x128xf32> to vector<1x128xf32>
    %3 = vector.extract_strided_slice %0 {offsets = [2, 0], sizes = [1, 128], strides = [1, 1]} : vector<8x128xf32> to vector<1x128xf32>
    %4 = vector.extract_strided_slice %0 {offsets = [3, 0], sizes = [1, 1], strides = [1, 1]} : vector<8x128xf32> to vector<1x1xf32>
    %c0_1 = arith.constant 0 : index
    %c0_2 = arith.constant 0 : index
    %5 = vector.load %arg1[%c0_1, %c0_2] : memref<128x32xf32, #tpu.memory_space<vmem>>, vector<128x32xf32>
    %6 = arith.truncf %5 : vector<128x32xf32> to vector<128x32xbf16>
    %c0_3 = arith.constant 0 : index
    %c0_4 = arith.constant 0 : index
    %7 = vector.load %arg2[%c0_3, %c0_4] : memref<32x128xbf16, #tpu.memory_space<vmem>>, vector<32x128xbf16>
    %cst = arith.constant dense<0.000000e+00> : vector<128x128xf32>
    %8 = tpu.matmul %6, %7, %cst {dimension_numbers = #tpu.dot_dimension_numbers<[1], [0], [0], [1], [0, 0, 1, 1], [], []>} : vector<128x32xbf16>, vector<32x128xbf16>, vector<128x128xf32> -> vector<128x128xf32>
    %9 = vector.broadcast %1 : vector<1x128xf32> to vector<128x128xf32>
    %10 = arith.addf %8, %9 : vector<128x128xf32>
    %11 = math.tanh %10 : vector<128x128xf32>
    %12 = arith.truncf %11 : vector<128x128xf32> to vector<128x128xbf16>
    %c0_5 = arith.constant 0 : index
    %c0_6 = arith.constant 0 : index
    %13 = vector.load %arg3[%c0_5, %c0_6] : memref<128x128xbf16, #tpu.memory_space<vmem>>, vector<128x128xbf16>
    %cst_7 = arith.constant dense<0.000000e+00> : vector<128x128xf32>
    %14 = tpu.matmul %12, %13, %cst_7 {dimension_numbers = #tpu.dot_dimension_numbers<[1], [0], [0], [1], [0, 0, 1, 1], [], []>} : vector<128x128xbf16>, vector<128x128xbf16>, vector<128x128xf32> -> vector<128x128xf32>
    %15 = vector.broadcast %2 : vector<1x128xf32> to vector<128x128xf32>
    %16 = arith.addf %14, %15 : vector<128x128xf32>
    %17 = math.tanh %16 : vector<128x128xf32>
    %18 = vector.broadcast %3 : vector<1x128xf32> to vector<128x128xf32>
    %19 = arith.mulf %17, %18 : vector<128x128xf32>
    %cst_8 = arith.constant dense<0.000000e+00> : vector<128xf32>
    %20 = vector.multi_reduction <add>, %19, %cst_8 [1] : vector<128x128xf32> to vector<128xf32>
    %21 = vector.shape_cast %20 : vector<128xf32> to vector<128x1xf32>
    %22 = vector.broadcast %4 : vector<1x1xf32> to vector<128x1xf32>
    %23 = arith.addf %21, %22 : vector<128x1xf32>
    %c0_9 = arith.constant 0 : index
    %c0_10 = arith.constant 0 : index
    %24 = vector.load %arg5[%c0_9, %c0_10] : memref<128x1xf32, #tpu.memory_space<vmem>>, vector<128x1xf32>
    tpu.vector_store %arg5[%c0_9, %c0_10], %23 {strides = array<i32>} : memref<128x1xf32, #tpu.memory_space<vmem>>, vector<128x1xf32>,
    %25 = vector.extract_strided_slice %17 {offsets = [0, 64], sizes = [128, 64], strides = [1, 1]} : vector<128x128xf32> to vector<128x64xf32>
    %26 = arith.truncf %25 : vector<128x64xf32> to vector<128x64xbf16>
    %c0_11 = arith.constant 0 : index
    %c0_12 = arith.constant 0 : index
    %27 = vector.load %arg6[%c0_11, %c0_12] : memref<128x64xbf16, #tpu.memory_space<vmem>>, vector<128x64xbf16>
    tpu.vector_store %arg6[%c0_11, %c0_12], %26 {strides = array<i32>} : memref<128x64xbf16, #tpu.memory_space<vmem>>, vector<128x64xbf16>,
    return
  }
  func.func @transform_0(%arg0: i32) -> (i32, i32) {
    %c0_i32 = arith.constant 0 : i32
    %c0_i32_0 = arith.constant 0 : i32
    return %arg0, %c0_i32 : i32, i32
  }
  func.func @transform_1(%arg0: i32) -> (i32, i32) {
    %c0_i32 = arith.constant 0 : i32
    %c0_i32_0 = arith.constant 0 : i32
    %c0_i32_1 = arith.constant 0 : i32
    return %c0_i32, %c0_i32_0 : i32, i32
  }
  func.func @transform_2(%arg0: i32) -> (i32, i32) {
    %c0_i32 = arith.constant 0 : i32
    %c0_i32_0 = arith.constant 0 : i32
    %c0_i32_1 = arith.constant 0 : i32
    return %c0_i32, %c0_i32_0 : i32, i32
  }
  func.func @transform_3(%arg0: i32) -> (i32, i32) {
    %c0_i32 = arith.constant 0 : i32
    %c0_i32_0 = arith.constant 0 : i32
    %c0_i32_1 = arith.constant 0 : i32
    return %c0_i32, %c0_i32_0 : i32, i32
  }
  func.func @transform_4(%arg0: i32) -> (i32, i32) {
    %c0_i32 = arith.constant 0 : i32
    %c0_i32_0 = arith.constant 0 : i32
    return %arg0, %c0_i32 : i32, i32
  }
  func.func @transform_5(%arg0: i32) -> (i32, i32) {
    %c0_i32 = arith.constant 0 : i32
    %c0_i32_0 = arith.constant 0 : i32
    return %arg0, %c0_i32 : i32, i32
  }
}

module attributes {stable_mosaic.version = 11 : i64} {
  func.func @mlp_base_fused_kernel(%arg0: i32, %arg1: memref<128x32xf32, #tpu.memory_space<vmem>>, %arg2: memref<32x128xbf16, #tpu.memory_space<vmem>>, %arg3: memref<128x128xbf16, #tpu.memory_space<vmem>>, %arg4: memref<8x128xf32, #tpu.memory_space<vmem>>, %arg5: memref<128x1xf32, #tpu.memory_space<vmem>>, %arg6: memref<128x64xbf16, #tpu.memory_space<vmem>>) attributes {dimension_semantics = [#tpu.dimension_semantics<parallel>], iteration_bounds = array<i64: 2>, scalar_prefetch = 0 : i64, scratch_operands = 0 : i64, tpu.core_type = #tpu.core_type<tc>, window_params = [{transform_indices = @transform_0, window_bounds = array<i64: 128, 32>}, {pipeline_mode = #tpu.pipeline_mode<synchronous>, transform_indices = @transform_1, window_bounds = array<i64: 32, 128>}, {pipeline_mode = #tpu.pipeline_mode<synchronous>, transform_indices = @transform_2, window_bounds = array<i64: 128, 128>}, {pipeline_mode = #tpu.pipeline_mode<synchronous>, transform_indices = @transform_3, window_bounds = array<i64: 8, 128>}, {transform_indices = @transform_4, window_bounds = array<i64: 128, 1>}, {transform_indices = @transform_5, window_bounds = array<i64: 128, 64>}]} {
    %c0 = arith.constant 0 : index
    %c0_0 = arith.constant 0 : index
    %0 = vector.load %arg4[%c0, %c0_0] : memref<8x128xf32, #tpu.memory_space<vmem>>, vector<8x128xf32>
    %1 = vector.extract_strided_slice %0 {offsets = [0, 0], sizes = [1, 128], strides = [1, 1]} : vector<8x128xf32> to vector<1x128xf32>
    %2 = vector.extract_strided_slice %0 {offsets = [1, 0], sizes = [1, 128], strides = [1, 1]} : vector<8x128xf32> to vector<1x128xf32>
    %3 = vector.extract_strided_slice %0 {offsets = [2, 0], sizes = [1, 128], strides = [1, 1]} : vector<8x128xf32> to vector<1x128xf32>
    %4 = vector.extract_strided_slice %0 {offsets = [3, 0], sizes = [1, 1], strides = [1, 1]} : vector<8x128xf32> to vector<1x1xf32>
    %c0_1 = arith.constant 0 : index
    %c0_2 = arith.constant 0 : index
    %5 = vector.load %arg1[%c0_1, %c0_2] : memref<128x32xf32, #tpu.memory_space<vmem>>, vector<128x32xf32>
    %6 = arith.truncf %5 : vector<128x32xf32> to vector<128x32xbf16>
    %c0_3 = arith.constant 0 : index
    %c0_4 = arith.constant 0 : index
    %7 = vector.load %arg2[%c0_3, %c0_4] : memref<32x128xbf16, #tpu.memory_space<vmem>>, vector<32x128xbf16>
    %cst = arith.constant dense<0.000000e+00> : vector<128x128xf32>
    %8 = tpu.matmul %6, %7, %cst {dimension_numbers = #tpu.dot_dimension_numbers<[1], [0], [0], [1], [0, 0, 1, 1], [], []>} : vector<128x32xbf16>, vector<32x128xbf16>, vector<128x128xf32> -> vector<128x128xf32>
    %9 = vector.broadcast %1 : vector<1x128xf32> to vector<128x128xf32>
    %10 = arith.addf %8, %9 : vector<128x128xf32>
    %11 = math.tanh %10 : vector<128x128xf32>
    %12 = arith.truncf %11 : vector<128x128xf32> to vector<128x128xbf16>
    %c0_5 = arith.constant 0 : index
    %c0_6 = arith.constant 0 : index
    %13 = vector.load %arg3[%c0_5, %c0_6] : memref<128x128xbf16, #tpu.memory_space<vmem>>, vector<128x128xbf16>
    %cst_7 = arith.constant dense<0.000000e+00> : vector<128x128xf32>
    %14 = tpu.matmul %12, %13, %cst_7 {dimension_numbers = #tpu.dot_dimension_numbers<[1], [0], [0], [1], [0, 0, 1, 1], [], []>} : vector<128x128xbf16>, vector<128x128xbf16>, vector<128x128xf32> -> vector<128x128xf32>
    %15 = vector.broadcast %2 : vector<1x128xf32> to vector<128x128xf32>
    %16 = arith.addf %14, %15 : vector<128x128xf32>
    %17 = math.tanh %16 : vector<128x128xf32>
    %18 = vector.broadcast %3 : vector<1x128xf32> to vector<128x128xf32>
    %19 = arith.mulf %17, %18 : vector<128x128xf32>
    %cst_8 = arith.constant dense<0.000000e+00> : vector<128xf32>
    %20 = vector.multi_reduction <add>, %19, %cst_8 [1] : vector<128x128xf32> to vector<128xf32>
    %21 = vector.shape_cast %20 : vector<128xf32> to vector<128x1xf32>
    %22 = vector.broadcast %4 : vector<1x1xf32> to vector<128x1xf32>
    %23 = arith.addf %21, %22 : vector<128x1xf32>
    %c0_9 = arith.constant 0 : index
    %c0_10 = arith.constant 0 : index
    %24 = vector.load %arg5[%c0_9, %c0_10] : memref<128x1xf32, #tpu.memory_space<vmem>>, vector<128x1xf32>
    tpu.vector_store %arg5[%c0_9, %c0_10], %23 {strides = array<i32>} : memref<128x1xf32, #tpu.memory_space<vmem>>, vector<128x1xf32>,
    %25 = vector.extract_strided_slice %17 {offsets = [0, 64], sizes = [128, 64], strides = [1, 1]} : vector<128x128xf32> to vector<128x64xf32>
    %26 = arith.truncf %25 : vector<128x64xf32> to vector<128x64xbf16>
    %c0_11 = arith.constant 0 : index
    %c0_12 = arith.constant 0 : index
    %27 = vector.load %arg6[%c0_11, %c0_12] : memref<128x64xbf16, #tpu.memory_space<vmem>>, vector<128x64xbf16>
    tpu.vector_store %arg6[%c0_11, %c0_12], %26 {strides = array<i32>} : memref<128x64xbf16, #tpu.memory_space<vmem>>, vector<128x64xbf16>,
    return
  }
  func.func @transform_0(%arg0: i32) -> (i32, i32) {
    %c0_i32 = arith.constant 0 : i32
    %c0_i32_0 = arith.constant 0 : i32
    return %arg0, %c0_i32 : i32, i32
  }
  func.func @transform_1(%arg0: i32) -> (i32, i32) {
    %c0_i32 = arith.constant 0 : i32
    %c0_i32_0 = arith.constant 0 : i32
    %c0_i32_1 = arith.constant 0 : i32
    return %c0_i32, %c0_i32_0 : i32, i32
  }
  func.func @transform_2(%arg0: i32) -> (i32, i32) {
    %c0_i32 = arith.constant 0 : i32
    %c0_i32_0 = arith.constant 0 : i32
    %c0_i32_1 = arith.constant 0 : i32
    return %c0_i32, %c0_i32_0 : i32, i32
  }
  func.func @transform_3(%arg0: i32) -> (i32, i32) {
    %c0_i32 = arith.constant 0 : i32
    %c0_i32_0 = arith.constant 0 : i32
    %c0_i32_1 = arith.constant 0 : i32
    return %c0_i32, %c0_i32_0 : i32, i32
  }
  func.func @transform_4(%arg0: i32) -> (i32, i32) {
    %c0_i32 = arith.constant 0 : i32
    %c0_i32_0 = arith.constant 0 : i32
    return %arg0, %c0_i32 : i32, i32
  }
  func.func @transform_5(%arg0: i32) -> (i32, i32) {
    %c0_i32 = arith.constant 0 : i32
    %c0_i32_0 = arith.constant 0 : i32
    return %arg0, %c0_i32 : i32, i32
  }
}

</mosaic_0001>

<bundles_post_ra>
// kernel: tpu_custom_call.1
= control target key start
LH: loop header
LB: loop body
LE: loop exit
PB: predicated region body
PF: predicated region fallthrough
CT: control target
= control target key end

     0   :  { %s1186_s18 = smov 0   ;;  %s1462_s0 = inlined_call_operand.vmem [shape: f32[256,32], index: 0, kind: input, shape index: {}]   ;;  %s1463_s1 = inlined_call_operand.vmem [shape: bf16[32,128], index: 1, kind: input, shape index: {}]   ;;  %s1464_s2 = inlined_call_operand.vmem [shape: bf16[128,128], index: 2, kind: input, shape index: {}]   ;;  %s1465_s3 = inlined_call_operand.vmem [shape: f32[8,128], index: 3, kind: input, shape index: {}]   ;;  %s1466_s4 = inlined_call_operand.vmem [shape: f32[256,1], index: 4, kind: output, shape index: {0}]   ;;  %s1467_s5 = inlined_call_operand.vmem [shape: bf16[256,64], index: 5, kind: output, shape index: {1}]  }
   0x1 LB: > { %s907_s19 = sadd.s32 4294967295, %s1153_s18   ;;  %p911_p0 = scmp.ge.s32.totalorder %s1153_s18, 1  ;;  %s1153_s18 = sphi %s1186_s18, %s16_s18  }
   0x2   : > { %p191_p1 = scmp.lt.s32.totalorder %s1153_s18, 3 }
   0x4   : > { %p192_p2 = pnand %p911_p0, %p191_p1 }
   0x5   : > { %v1073_v0 = vld [vmem:[%s1463_s1] sm:$0xff] (!%p192_p2)   ;;  %s912_s22 = sshll.u32 (!%p192_p2), %s907_s19, 4  ;;  %v1074_v1 = vld [vmem:[%s1463_s1 + $0x8] sm:$0xff] (!%p192_p2)   ;;  %v1077_v4 = vld [vmem:[%s1464_s2 + $0x10] sm:$0xff] (!%p192_p2)   ;;  %vm288_vm0 = vcmask (!%p192_p2), 261120   ;;  %v272_v34 = vlaneseq (!%p192_p2)  ;;  %s1155_s24 = smov (!%p192_p2), 64  }
   0x6   : > { %195 = sbr.rel (%p192_p2) target bundleno = 955 (0x3bb), region = 36  ;;  %p225_p3 = scmp.lt.s32.totalorder (!%p192_p2), %s912_s22, 31  ;;  %996 = vmatprep.subr.bf16.mxu0 (!%p192_p2), %v1073_v0  ;;  %v1075_v2 = vld [vmem:[%s1464_s2] sm:$0xff] (!%p192_p2)   ;;  %v1076_v3 = vld [vmem:[%s1464_s2 + $0x8] sm:$0xff] (!%p192_p2)   ;;  %v1078_v16 = vld [vmem:[%s1464_s2 + $0x18] sm:$0xff] (!%p192_p2)   ;;  %vm687_vm1 = vcmask (!%p192_p2), 7168  }
   0x7   : > { %997 = vmatpush3.bf16.msra.mxu0 (!%p192_p2), %v1073_v0  ;;  %1048 = vmatprep.subr.bf16.mxu1 (!%p192_p2), %v1075_v2  ;;  %v1079_v26 = vld [vmem:[%s1464_s2 + $0x20] sm:$0xff] (!%p192_p2)   ;;  %v1080_v31 = vld [vmem:[%s1464_s2 + $0x28] sm:$0xff] (!%p192_p2)   ;;  %v1081_v32 = vld [vmem:[%s1464_s2 + $0x30] sm:$0xff] (!%p192_p2)   ;;  %v1258_v35 = vshrl.u32 (!%p192_p2), %v272_v34, 7  ;;  %vm800_vm2 = vcmask (!%p192_p2), 519168  }
   0x8   : > { %998 = vmatprep.subr.bf16.mxu0 (!%p192_p2), %v1074_v1  ;;  %1056 = vmatpush3.bf16.msra.mxu1 (!%p192_p2), %v1075_v2  ;;  %v1082_v33 = vld [vmem:[%s1464_s2 + $0x38] sm:$0xff] (!%p192_p2)   ;;  %v1264_v37 = vld [vmem:[%s1465_s3] sm:$0xff] (!%p192_p2) }
   0x9   : > { %1049 = vmatprep.subr.bf16.mxu1 (!%p192_p2), %v1076_v3  ;;  %v274_v36 = vsub.s32 (!%p192_p2), 0, %v1258_v35 }
   0xb   : > { %999 = vmatpush3.bf16.msra.mxu0 (!%p192_p2), %v1074_v1  ;;  %v1267_v38 = vrot.slane (!%p192_p2), %v1264_v37, %v274_v36 }
   0xc   : > { %1016 = vmatprep.subr.bf16.mxu0 (!%p192_p2), %v1075_v2  ;;  %1057 = vmatpush3.bf16.msra.mxu1 (!%p192_p2), %v1076_v3 }
   0xd   : > { %s1469_s22 = smov (!%p225_p3, %s912_s22), 31  ;;  %1050 = vmatprep.subr.bf16.mxu1 %v1077_v4 }
   0xe   : > { %s913_s29 = sshll.u32 %s1469_s22, 3  ;;  %s917_s25 = sshll.u32 %s1469_s22, 2 }
   0xf   : > { %s1214_s7 = scalar_lea.vmem %s1462_s0, %s913_s29  ;;  %s1338_s28 = scalar_lea.vmem %s1466_s4, %s913_s29 }
  0x10   : > { %v244_v5 = vld [vmem:[%s1214_s7] sm:$0xff]  ;;  %v245_v6 = vld [vmem:[%s1214_s7 + $0x8] sm:$0xff]  ;;  %v246_v7 = vld [vmem:[%s1214_s7 + $0x10] sm:$0xff]  ;;  %1058 = vmatpush3.bf16.msra.mxu1 %v1077_v4 }
  0x11   : > { %v260_v8 = vpack.c.bf16 %v245_v6, %v244_v5  ;;  %v247_v9 = vld [vmem:[%s1214_s7 + $0x18] sm:$0xff]  ;;  %v248_v10 = vld [vmem:[%s1214_s7 + $0x20] sm:$0xff]  ;;  %v249_v11 = vld [vmem:[%s1214_s7 + $0x28] sm:$0xff]  ;;  %1051 = vmatprep.subr.bf16.mxu1 %v1078_v16 }
  0x12   : > { %v261_v12 = vpack.c.bf16 %v247_v9, %v246_v7  ;;  %v262_v13 = vpack.c.bf16 %v249_v11, %v248_v10  ;;  %v250_v14 = vld [vmem:[%s1214_s7 + $0x30] sm:$0xff]  ;;  %v251_v15 = vld [vmem:[%s1214_s7 + $0x38] sm:$0xff]  ;;  %v252_v17 = vld [vmem:[%s1214_s7 + $0x40] sm:$0xff] }
  0x13   : > { %1000 = vmatprep.mubr.msk.bf16.mxu0 %vm288_vm0, %v260_v8  ;;  %v253_v18 = vld [vmem:[%s1214_s7 + $0x48] sm:$0xff]  ;;  %v263_v19 = vpack.c.bf16 %v251_v15, %v250_v14  ;;  %v254_v21 = vld [vmem:[%s1214_s7 + $0x50] sm:$0xff]  ;;  %v255_v22 = vld [vmem:[%s1214_s7 + $0x58] sm:$0xff] }
  0x14   : > { %1001 = vmatmul.mubr.msk.bf16.vlgmr.msra.gmra.mrb[0].mxu0 %vm288_vm0, %v261_v12  ;;  %v264_v20 = vpack.c.bf16 %v253_v18, %v252_v17  ;;  %1059 = vmatpush3.bf16.msra.mxu1 %v1078_v16  ;;  %v265_v23 = vpack.c.bf16 %v255_v22, %v254_v21  ;;  %v256_v24 = vld [vmem:[%s1214_s7 + $0x60] sm:$0xff]  ;;  %v257_v25 = vld [vmem:[%s1214_s7 + $0x68] sm:$0xff]  ;;  %v258_v28 = vld [vmem:[%s1214_s7 + $0x70] sm:$0xff] }
  0x15   : > { %1004 = vmatprep.mubr.msk.bf16.mxu0 %vm288_vm0, %v262_v13  ;;  %1017 = vmatpush3.bf16.msra.mxu0 %v1075_v2  ;;  %v266_v27 = vpack.c.bf16 %v257_v25, %v256_v24  ;;  %v259_v29 = vld [vmem:[%s1214_s7 + $0x78] sm:$0xff]  ;;  %s1345_s7 = scalar_lea.vmem %s1467_s5, %s917_s25 }
  0x16   : > { %1018 = vmatprep.subr.bf16.mxu0 %v1076_v3  ;;  %v267_v30 = vpack.c.bf16 %v259_v29, %v258_v28  ;;  %1052 = vmatprep.subr.bf16.mxu1 %v1079_v26 }
  0x18   : > { %1060 = vmatpush3.bf16.msra.mxu1 %v1079_v26 }
  0x19   : > { %1019 = vmatpush3.bf16.msra.mxu0 %v1076_v3  ;;  %1053 = vmatprep.subr.bf16.mxu1 %v1080_v31 }
  0x1a   : > { %1020 = vmatprep.subr.bf16.mxu0 %v1077_v4 }
  0x1c   : > { %1005 = vmatmul.mubr.msk.bf16.gmra.mrb[4].mxu0 %vm288_vm0, %v263_v19  ;;  %1061 = vmatpush3.bf16.msra.mxu1 %v1080_v31 }
  0x1d   : > { %1008 = vmatprep.mubr.msk.bf16.mxu0 %vm288_vm0, %v264_v20  ;;  %1021 = vmatpush3.bf16.msra.mxu0 %v1077_v4 }
  0x1e   : > { %1022 = vmatprep.subr.bf16.mxu0 %v1078_v16  ;;  %1054 = vmatprep.subr.bf16.mxu1 %v1081_v32 }
  0x20   : > { %1062 = vmatpush3.bf16.msra.mxu1 %v1081_v32 }
  0x21   : > { %1023 = vmatpush3.bf16.msra.mxu0 %v1078_v16  ;;  %1055 = vmatprep.subr.bf16.mxu1 %v1082_v33 }
  0x22   : > { %1024 = vmatprep.subr.bf16.mxu0 %v1079_v26 }
  0x24   : > { %1009 = vmatmul.mubr.msk.bf16.gmra.mrb[8].mxu0 %vm288_vm0, %v265_v23  ;;  %1063 = vmatpush3.bf16.msra.mxu1 %v1082_v33 }
  0x25   : > { %1012 = vmatprep.mubr.msk.bf16.mxu0 %vm288_vm0, %v266_v27  ;;  %1025 = vmatpush3.bf16.msra.mxu0 %v1079_v26 }
  0x26   : > { %1026 = vmatprep.subr.bf16.mxu0 %v1080_v31 }
  0x29   : > { %1027 = vmatpush3.bf16.msra.mxu0 %v1080_v31  ;;  %v452_v31 = vsub.s32 1, %v1258_v35 }
  0x2a   : > { %1028 = vmatprep.subr.bf16.mxu0 %v1081_v32 }
  0x2c   : > { %1013 = vmatmul.mubr.msk.bf16.gmra.mrb[12].mxu0 %vm288_vm0, %v267_v30 }
  0x2d   : > { %1029 = vmatpush3.bf16.msra.mxu0 %v1081_v32  ;;  %v1287_v32 = vrot.slane %v1264_v37, %v452_v31 }
  0x2e   : > { %1030 = vmatprep.subr.bf16.mxu0 %v1082_v33 }
  0x31   : > { %1031 = vmatpush3.bf16.msra.mxu0 %v1082_v33 }
  0xe7   : > { %v1002_v39 = vpop.f32.mrb[0].mxu0 }
  0xe8   : > { %v356_v40 = vadd.f32 %v1002_v39, %v1267_v38  ;;  %v347_v41 = vpop.f32.mrb[1].mxu0 }
  0xe9   : > { %v348_v42 = vadd.f32 %v347_v41, %v1267_v38  ;;  %v1003_v43 = vpop.f32.mrb[2].mxu0  ;;  %v617_v41 = vsub.s32 2, %v1258_v35 }
  0xea   : > { %1083 = vtanh.f32 %v356_v40  ;;  %v359_v44 = vadd.f32 %v1003_v43, %v1267_v38  ;;  %v350_v45 = vpop.f32.mrb[3].mxu0 }
  0xeb   : > { %1085 = vtanh.f32 %v348_v42  ;;  %v351_v46 = vadd.f32 %v350_v45, %v1267_v38 }
  0xec   : > { %1087 = vtanh.f32 %v359_v44  ;;  %v1293_v44 = vrot.slane %v1264_v37, %v617_v41 }
  0xed   : > { %1089 = vtanh.f32 %v351_v46 }
  0xef   : > { %v1006_v47 = vpop.f32.mrb[4].mxu0 }
  0xf0   : > { %v372_v48 = vadd.f32 %v1006_v47, %v1267_v38  ;;  %v363_v49 = vpop.f32.mrb[5].mxu0 }
  0xf1   : > { %v364_v50 = vadd.f32 %v363_v49, %v1267_v38  ;;  %v1007_v51 = vpop.f32.mrb[6].mxu0 }
  0xf2   : > { %1091 = vtanh.f32 %v372_v48  ;;  %v375_v52 = vadd.f32 %v1007_v51, %v1267_v38  ;;  %v366_v53 = vpop.f32.mrb[7].mxu0 }
  0xf3   : > { %1093 = vtanh.f32 %v364_v50  ;;  %v367_v54 = vadd.f32 %v366_v53, %v1267_v38 }
  0xf4   : > { %v1084_v55 = vpop.eup %1083  ;;  %1095 = vtanh.f32 %v375_v52 }
  0xf5   : > { %v1086_v56 = vpop.eup %1085  ;;  %1097 = vtanh.f32 %v367_v54 }
  0xf6   : > { %v1088_v57 = vpop.eup %1087 }
  0xf7   : > { %v1090_v58 = vpop.eup %1089  ;;  %v427_v59 = vpack.c.bf16 %v1088_v57, %v1084_v55  ;;  %v1010_v60 = vpop.f32.mrb[8].mxu0 }
  0xf8   : > { %v426_v61 = vpack.c.bf16 %v1090_v58, %v1086_v56  ;;  %v388_v62 = vadd.f32 %v1010_v60, %v1267_v38  ;;  %v379_v63 = vpop.f32.mrb[9].mxu0 }
  0xf9   : > { %v380_v0 = vadd.f32 %v379_v63, %v1267_v38  ;;  %v1011_v1 = vpop.f32.mrb[10].mxu0 }
  0xfa   : > { %1032 = vmatprep.mubr.bf16.mxu0 %v426_v61  ;;  %1099 = vtanh.f32 %v388_v62  ;;  %v391_v2 = vadd.f32 %v1011_v1, %v1267_v38  ;;  %v382_v3 = vpop.f32.mrb[11].mxu0 }
  0xfb   : > { %1033 = vmatmul.mubr.bf16.vlgmr.msra.gmra.mrb[16].mxu0 %v427_v59  ;;  %1101 = vtanh.f32 %v380_v0  ;;  %v383_v4 = vadd.f32 %v382_v3, %v1267_v38 }
  0xfc   : > { %v1092_v5 = vpop.eup %1091  ;;  %1103 = vtanh.f32 %v391_v2 }
  0xfd   : > { %v1094_v6 = vpop.eup %1093  ;;  %1105 = vtanh.f32 %v383_v4 }
  0xfe   : > { %v1096_v7 = vpop.eup %1095 }
  0xff   : > { %v1098_v8 = vpop.eup %1097  ;;  %v429_v9 = vpack.c.bf16 %v1096_v7, %v1092_v5  ;;  %v1014_v17 = vpop.f32.mrb[12].mxu0 }
 0x100   : > { %v428_v10 = vpack.c.bf16 %v1098_v8, %v1094_v6  ;;  %v404_v18 = vadd.f32 %v1014_v17, %v1267_v38  ;;  %v395_v19 = vpop.f32.mrb[13].mxu0  ;;  %v669_v17 = vsub.s32 3, %v1258_v35 }
 0x101   : > { %v396_v20 = vadd.f32 %v395_v19, %v1267_v38  ;;  %v1015_v21 = vpop.f32.mrb[14].mxu0 }
 0x102   : > { %1036 = vmatprep.mubr.bf16.mxu1 %v428_v10  ;;  %1107 = vtanh.f32 %v404_v18  ;;  %v407_v22 = vadd.f32 %v1015_v21, %v1267_v38  ;;  %v398_v23 = vpop.f32.mrb[15].mxu0  ;;  %v1330_v18 = vrot.slane %v1264_v37, %v669_v17 }
 0x103   : > { %1037 = vmatmul.mubr.bf16.vlgmr.msra.gmra.mrb[0].mxu1 %v429_v9  ;;  %1109 = vtanh.f32 %v396_v20  ;;  %v399_v24 = vadd.f32 %v398_v23, %v1267_v38 }
 0x104   : > { %v1100_v11 = vpop.eup %1099  ;;  %1111 = vtanh.f32 %v407_v22 }
 0x105   : > { %v1102_v12 = vpop.eup %1101  ;;  %1113 = vtanh.f32 %v399_v24 }
 0x106   : > { %v1104_v13 = vpop.eup %1103 }
 0x107   : > { %v1106_v14 = vpop.eup %1105  ;;  %v431_v15 = vpack.c.bf16 %v1104_v13, %v1100_v11 }
 0x108   : > { %v430_v16 = vpack.c.bf16 %v1106_v14, %v1102_v12 }
 0x10a   : > { %1040 = vmatprep.mubr.bf16.mxu1 %v430_v16 }
 0x10b   : > { %1041 = vmatmul.mubr.bf16.gmra.mrb[4].mxu1 %v431_v15 }
 0x10c   : > { %v1108_v25 = vpop.eup %1107 }
 0x10d   : > { %v1110_v26 = vpop.eup %1109 }
 0x10e   : > { %v1112_v27 = vpop.eup %1111 }
 0x10f   : > { %v1114_v28 = vpop.eup %1113  ;;  %v433_v30 = vpack.c.bf16 %v1112_v27, %v1108_v25 }
 0x110   : > { %v432_v29 = vpack.c.bf16 %v1114_v28, %v1110_v26 }
 0x112   : > { %1044 = vmatprep.mubr.bf16.mxu1 %v432_v29 }
 0x113   : > { %1045 = vmatmul.mubr.bf16.gmra.mrb[8].mxu1 %v433_v30 }
 0x1ce   : > { %v1034_v33 = vpop.f32.mrb[16].mxu0 }
 0x1cf   : > { %v545_v34 = vadd.f32 %v1034_v33, %v1287_v32  ;;  %v536_v36 = vpop.f32.mrb[17].mxu0 }
 0x1d0   : > { %v537_v38 = vadd.f32 %v536_v36, %v1287_v32  ;;  %v1035_v39 = vpop.f32.mrb[18].mxu0 }
 0x1d1   : > { %1115 = vtanh.f32 %v545_v34  ;;  %v539_v40 = vpop.f32.mrb[19].mxu0  ;;  %v548_v54 = vadd.f32 %v1035_v39, %v1287_v32 }
 0x1d2   : > { %1117 = vtanh.f32 %v537_v38  ;;  %v540_v55 = vadd.f32 %v539_v40, %v1287_v32 }
 0x1d3   : > { %1119 = vtanh.f32 %v548_v54 }
 0x1d4   : > { %1121 = vtanh.f32 %v540_v55 }
 0x1d6   : > { %v1038_v42 = vpop.f32.mrb[0].mxu1 }
 0x1d7   : > { %v552_v43 = vpop.f32.mrb[1].mxu1  ;;  %v561_v56 = vadd.f32 %v1038_v42, %v1287_v32 }
 0x1d8   : > { %v1039_v45 = vpop.f32.mrb[2].mxu1  ;;  %v553_v10 = vadd.f32 %v552_v43, %v1287_v32 }
 0x1d9   : > { %v1295_v46 = vpop.f32.mrb[3].mxu1  ;;  %1123 = vtanh.f32 %v561_v56  ;;  %v564_v9 = vadd.f32 %v1039_v45, %v1287_v32 }
 0x1da   : > { %v556_v37 = vadd.f32 %v1295_v46, %v1287_v32 }
 0x1db   : > { %v1116_v47 = vpop.eup %1115  ;;  %1125 = vtanh.f32 %v564_v9 }
 0x1dc   : > { %v1118_v48 = vpop.eup %1117  ;;  %v621_v49 = vmul.f32 %v1116_v47, %v1293_v44  ;;  %v956_v51 = vpack.c.bf16 %v1116_v47, %v1116_v47  ;;  %1127 = vtanh.f32 %v553_v10 }
 0x1dd   : > { %v619_v50 = vmul.f32 %v1118_v48, %v1293_v44  ;;  %v954_v53 = vpack.c.bf16 %v1118_v48, %v1118_v48  ;;  %v1120_v57 = vpop.eup %1119 }
 0x1de   : > { %639 = vadd.xlane.f32.xlu1 %v621_v49  ;;  %v1042_v52 = vpop.f32.mrb[4].mxu1  ;;  %v1122_v58 = vpop.eup %1121  ;;  %v622_v60 = vmul.f32 %v1120_v57, %v1293_v44  ;;  %v957_v2 = vpack.c.bf16 %v1120_v57, %v1120_v57 }
 0x1df   : > { %635 = vadd.xlane.f32.xlu0 %v619_v50  ;;  %v620_v61 = vmul.f32 %v1122_v58, %v1293_v44  ;;  %v1307_v63 = vpop.f32.mrb[5].mxu1  ;;  %v955_v3 = vpack.c.bf16 %v1122_v58, %v1122_v58  ;;  %v577_v35 = vadd.f32 %v1042_v52, %v1287_v32 }
 0x1e0   : > { %v1043_v0 = vpop.f32.mrb[6].mxu1  ;;  %v569_v39 = vadd.f32 %v1307_v63, %v1287_v32 }
 0x1e1   : > { %v1309_v1 = vpop.f32.mrb[7].mxu1  ;;  %1129 = vtanh.f32 %v577_v35  ;;  %v580_v38 = vadd.f32 %v1043_v0, %v1287_v32 }
 0x1e2   : > { %1131 = vtanh.f32 %v556_v37  ;;  %v572_v52 = vadd.f32 %v1309_v1, %v1287_v32 }
 0x1e3   : > { %v1124_v59 = vpop.eup %1123  ;;  %1133 = vtanh.f32 %v580_v38 }
 0x1e4   : > { %v625_v62 = vmul.f32 %v1124_v59, %v1293_v44  ;;  %v960_v7 = vpack.c.bf16 %v1124_v59, %v1124_v59  ;;  %1135 = vtanh.f32 %v569_v39 }
 0x1e5   : > { %v1126_v11 = vpop.eup %1125  ;;  %1137 = vtanh.f32 %v572_v52 }
 0x1e6   : > { %v1312_v4 = vpop.f32.mrb[8].mxu1  ;;  %v1128_v12 = vpop.eup %1127  ;;  %v626_v13 = vmul.f32 %v1126_v11, %v1293_v44  ;;  %v961_v15 = vpack.c.bf16 %v1126_v11, %v1126_v11 }
 0x1e7   : > { %v1315_v5 = vpop.f32.mrb[9].mxu1  ;;  %v623_v14 = vmul.f32 %v1128_v12, %v1293_v44  ;;  %v958_v16 = vpack.c.bf16 %v1128_v12, %v1128_v12 }
 0x1e8   : > { %v1317_v6 = vpop.f32.mrb[10].mxu1  ;;  %v585_v58 = vadd.f32 %v1315_v5, %v1287_v32 }
 0x1e9   : > { %v1319_v8 = vpop.f32.mrb[11].mxu1 }
 0x1eb   : > { %v1130_v25 = vpop.eup %1129 }
 0x1ec   : > { %v1132_v26 = vpop.eup %1131  ;;  %v629_v27 = vmul.f32 %v1130_v25, %v1293_v44  ;;  %v964_v30 = vpack.c.bf16 %v1130_v25, %v1130_v25 }
 0x1ed   : > { %v624_v28 = vmul.f32 %v1132_v26, %v1293_v44  ;;  %v959_v29 = vpack.c.bf16 %v1132_v26, %v1132_v26  ;;  %v1134_v46 = vpop.eup %1133 }
 0x1ee   : > { %v1136_v47 = vpop.eup %1135  ;;  %v630_v48 = vmul.f32 %v1134_v46, %v1293_v44  ;;  %v965_v50 = vpack.c.bf16 %v1134_v46, %v1134_v46 }
 0x1ef   : > { %756 = vrot.lane.b32.xlu1 %v956_v51, %s1155_s24  ;;  %v627_v49 = vmul.f32 %v1136_v47, %v1293_v44  ;;  %v962_v51 = vpack.c.bf16 %v1136_v47, %v1136_v47 }
 0x1f5   : > { %752 = vrot.lane.b32.xlu0 %v954_v53, %s1155_s24  ;;  %v593_v53 = vadd.f32 %v1312_v4, %v1287_v32 }
 0x1f7   : > { %1139 = vtanh.f32 %v593_v53 }
 0x1f8   : > { %1141 = vtanh.f32 %v585_v58 }
 0x213   : > { %641 = vadd.xlane.f32.xlu1 %v622_v60 }
 0x214   : > { %637 = vadd.xlane.f32.xlu0 %v620_v61  ;;  %v1138_v61 = vpop.eup %1137 }
 0x215   : > { %v628_v63 = vmul.f32 %v1138_v61, %v1293_v44 }
 0x218   : > { %647 = vadd.xlane.f32.xlu0 %v625_v62  ;;  %v1140_v62 = vpop.eup %1139 }
 0x219   : > { %v633_v0 = vmul.f32 %v1140_v62, %v1293_v44  ;;  %v1142_v1 = vpop.eup %1141  ;;  %v968_v5 = vpack.c.bf16 %v1140_v62, %v1140_v62 }
 0x21a   : > { %v966_v4 = vpack.c.bf16 %v1142_v1, %v1142_v1 }
 0x224   : > { %758 = vrot.lane.b32.xlu1 %v957_v2, %s1155_s24  ;;  %v631_v2 = vmul.f32 %v1142_v1, %v1293_v44 }
 0x228   : > { %754 = vrot.lane.b32.xlu1 %v955_v3, %s1155_s24  ;;  %v963_v3 = vpack.c.bf16 %v1138_v61, %v1138_v61 }
 0x22e   : > { %764 = vrot.lane.b32.xlu0 %v960_v7, %s1155_s24  ;;  %v596_v7 = vadd.f32 %v1317_v6, %v1287_v32 }
 0x230   : > { %1143 = vtanh.f32 %v596_v7 }
 0x23a   : > { %v1144_v6 = vpop.eup %1143 }
 0x24c   : > { %649 = vadd.xlane.f32.xlu1 %v626_v13  ;;  %v588_v13 = vadd.f32 %v1319_v8, %v1287_v32 }
 0x24d   : > { %643 = vadd.xlane.f32.xlu0 %v623_v14 }
 0x24e   : > { %1145 = vtanh.f32 %v588_v13 }
 0x258   : > { %v1146_v17 = vpop.eup %1145 }
 0x259   : > { %v632_v32 = vmul.f32 %v1146_v17, %v1293_v44  ;;  %v967_v8 = vpack.c.bf16 %v1146_v17, %v1146_v17 }
 0x25d   : > { %766 = vrot.lane.b32.xlu1 %v961_v15, %s1155_s24 }
 0x263   : > { %760 = vrot.lane.b32.xlu0 %v958_v16, %s1155_s24  ;;  %v634_v16 = vmul.f32 %v1144_v6, %v1293_v44 }
 0x26b   : > { %v640_v19 = vpop.xlane.xlu1 %639 }
 0x26c   : > { %v673_v20 = vadd.f32 %v1330_v18, %v640_v19  ;;  %v636_v21 = vpop.xlane.xlu0 %635  ;;  %v969_v19 = vpack.c.bf16 %v1144_v6, %v1144_v6 }
 0x26d   : > { %v671_v22 = vadd.f32 %v1330_v18, %v636_v21 }
 0x26e   : > { %690 = vst.msk [vmem:[%s1338_s28 + $0x10] sm:$0xff] %vm687_vm1, %v673_v20 }
 0x26f   : > { %688 = vst.msk [vmem:[%s1338_s28] sm:$0xff] %vm687_vm1, %v671_v22  ;;  %v757_v23 = vpop.permute.xlu1 %756 }
 0x270   : > { %803 = vst.msk [vmem:[%s1345_s7 + $0x8] sm:$0xf] %vm800_vm2, %v757_v23  ;;  %v753_v24 = vpop.permute.xlu0 %752 }
 0x271   : > { %801 = vst.msk [vmem:[%s1345_s7] sm:$0xf] %vm800_vm2, %v753_v24 }
 0x281   : > { %645 = vadd.xlane.f32.xlu1 %v624_v28 }
 0x282   : > { %655 = vadd.xlane.f32.xlu0 %v629_v27 }
 0x292   : > { %762 = vrot.lane.b32.xlu1 %v959_v29, %s1155_s24 }
 0x298   : > { %772 = vrot.lane.b32.xlu0 %v964_v30, %s1155_s24 }
 0x2a0   : > { %v642_v31 = vpop.xlane.xlu1 %641 }
 0x2a1   : > { %v674_v33 = vadd.f32 %v1330_v18, %v642_v31  ;;  %v638_v34 = vpop.xlane.xlu0 %637 }
 0x2a2   : > { %v672_v36 = vadd.f32 %v1330_v18, %v638_v34 }
 0x2a3   : > { %691 = vst.msk [vmem:[%s1338_s28 + $0x18] sm:$0xff] %vm687_vm1, %v674_v33 }
 0x2a4   : > { %689 = vst.msk [vmem:[%s1338_s28 + $0x8] sm:$0xff] %vm687_vm1, %v672_v36  ;;  %v759_v40 = vpop.permute.xlu1 %758 }
 0x2a5   : > { %804 = vst.msk [vmem:[%s1345_s7 + $0xc] sm:$0xf] %vm800_vm2, %v759_v40  ;;  %v648_v41 = vpop.xlane.xlu0 %647 }
 0x2a6   : > { %v677_v42 = vadd.f32 %v1330_v18, %v648_v41 }
 0x2a8   : > { %v755_v43 = vpop.permute.xlu1 %754  ;;  %694 = vst.msk [vmem:[%s1338_s28 + $0x30] sm:$0xff] %vm687_vm1, %v677_v42 }
 0x2a9   : > { %802 = vst.msk [vmem:[%s1345_s7 + $0x4] sm:$0xf] %vm800_vm2, %v755_v43  ;;  %v765_v45 = vpop.permute.xlu0 %764 }
 0x2aa   : > { %807 = vst.msk [vmem:[%s1345_s7 + $0x18] sm:$0xf] %vm800_vm2, %v765_v45 }
 0x2b6   : > { %657 = vadd.xlane.f32.xlu1 %v630_v48 }
 0x2b7   : > { %651 = vadd.xlane.f32.xlu0 %v627_v49 }
 0x2c7   : > { %774 = vrot.lane.b32.xlu1 %v965_v50, %s1155_s24 }
 0x2cd   : > { %768 = vrot.lane.b32.xlu0 %v962_v51, %s1155_s24 }
 0x2d9   : > { %v650_v54 = vpop.xlane.xlu1 %649 }
 0x2da   : > { %v678_v55 = vadd.f32 %v1330_v18, %v650_v54  ;;  %v644_v56 = vpop.xlane.xlu0 %643 }
 0x2db   : > { %v675_v57 = vadd.f32 %v1330_v18, %v644_v56 }
 0x2dc   : > { %695 = vst.msk [vmem:[%s1338_s28 + $0x38] sm:$0xff] %vm687_vm1, %v678_v55 }
 0x2dd   : > { %692 = vst.msk [vmem:[%s1338_s28 + $0x20] sm:$0xff] %vm687_vm1, %v675_v57  ;;  %v767_v59 = vpop.permute.xlu1 %766 }
 0x2de   : > { %808 = vst.msk [vmem:[%s1345_s7 + $0x1c] sm:$0xf] %vm800_vm2, %v767_v59  ;;  %v761_v60 = vpop.permute.xlu0 %760 }
 0x2df   : > { %805 = vst.msk [vmem:[%s1345_s7 + $0x10] sm:$0xf] %vm800_vm2, %v761_v60 }
 0x2eb   : > { %653 = vadd.xlane.f32.xlu1 %v628_v63 }
 0x2ec   : > { %663 = vadd.xlane.f32.xlu0 %v633_v0 }
 0x2f0   : > { %659 = vadd.xlane.f32.xlu0 %v631_v2 }
 0x2fc   : > { %770 = vrot.lane.b32.xlu1 %v963_v3, %s1155_s24 }
 0x306   : > { %776 = vrot.lane.b32.xlu0 %v966_v4, %s1155_s24 }
 0x30a   : > { %780 = vrot.lane.b32.xlu0 %v968_v5, %s1155_s24 }
 0x30e   : > { %v646_v9 = vpop.xlane.xlu1 %645 }
 0x30f   : > { %v676_v10 = vadd.f32 %v1330_v18, %v646_v9  ;;  %v656_v11 = vpop.xlane.xlu0 %655 }
 0x310   : > { %v681_v12 = vadd.f32 %v1330_v18, %v656_v11 }
 0x311   : > { %693 = vst.msk [vmem:[%s1338_s28 + $0x28] sm:$0xff] %vm687_vm1, %v676_v10 }
 0x312   : > { %v763_v14 = vpop.permute.xlu1 %762  ;;  %698 = vst.msk [vmem:[%s1338_s28 + $0x50] sm:$0xff] %vm687_vm1, %v681_v12 }
 0x313   : > { %806 = vst.msk [vmem:[%s1345_s7 + $0x14] sm:$0xf] %vm800_vm2, %v763_v14  ;;  %v773_v15 = vpop.permute.xlu0 %772 }
 0x314   : > { %811 = vst.msk [vmem:[%s1345_s7 + $0x28] sm:$0xf] %vm800_vm2, %v773_v15 }
 0x320   : > { %665 = vadd.xlane.f32.xlu1 %v634_v16 }
 0x324   : > { %661 = vadd.xlane.f32.xlu1 %v632_v32 }
 0x335   : > { %778 = vrot.lane.b32.xlu1 %v967_v8, %s1155_s24 }
 0x339   : > { %782 = vrot.lane.b32.xlu1 %v969_v19, %s1155_s24 }
 0x343   : > { %v658_v20 = vpop.xlane.xlu1 %657 }
 0x344   : > { %v682_v21 = vadd.f32 %v1330_v18, %v658_v20  ;;  %v652_v22 = vpop.xlane.xlu0 %651 }
 0x345   : > { %v679_v35 = vadd.f32 %v1330_v18, %v652_v22 }
 0x346   : > { %699 = vst.msk [vmem:[%s1338_s28 + $0x58] sm:$0xff] %vm687_vm1, %v682_v21 }
 0x347   : > { %696 = vst.msk [vmem:[%s1338_s28 + $0x40] sm:$0xff] %vm687_vm1, %v679_v35  ;;  %v775_v44 = vpop.permute.xlu1 %774 }
 0x348   : > { %812 = vst.msk [vmem:[%s1345_s7 + $0x2c] sm:$0xf] %vm800_vm2, %v775_v44  ;;  %v769_v37 = vpop.permute.xlu0 %768 }
 0x349   : > { %809 = vst.msk [vmem:[%s1345_s7 + $0x20] sm:$0xf] %vm800_vm2, %v769_v37 }
 0x378   : > { %v654_v23 = vpop.xlane.xlu1 %653 }
 0x379   : > { %v680_v24 = vadd.f32 %v1330_v18, %v654_v23  ;;  %v664_v25 = vpop.xlane.xlu0 %663 }
 0x37a   : > { %v685_v26 = vadd.f32 %v1330_v18, %v664_v25 }
 0x37b   : > { %697 = vst.msk [vmem:[%s1338_s28 + $0x48] sm:$0xff] %vm687_vm1, %v680_v24 }
 0x37c   : > { %702 = vst.msk [vmem:[%s1338_s28 + $0x70] sm:$0xff] %vm687_vm1, %v685_v26  ;;  %v771_v27 = vpop.permute.xlu1 %770 }
 0x37d   : > { %810 = vst.msk [vmem:[%s1345_s7 + $0x24] sm:$0xf] %vm800_vm2, %v771_v27  ;;  %v660_v28 = vpop.xlane.xlu0 %659 }
 0x37e   : > { %v683_v29 = vadd.f32 %v1330_v18, %v660_v28 }
 0x380   : > { %700 = vst.msk [vmem:[%s1338_s28 + $0x60] sm:$0xff] %vm687_vm1, %v683_v29 }
 0x381   : > { %v777_v30 = vpop.permute.xlu0 %776 }
 0x382   : > { %813 = vst.msk [vmem:[%s1345_s7 + $0x30] sm:$0xf] %vm800_vm2, %v777_v30 }
 0x385   : > { %v781_v31 = vpop.permute.xlu0 %780 }
 0x386   : > { %815 = vst.msk [vmem:[%s1345_s7 + $0x38] sm:$0xf] %vm800_vm2, %v781_v31 }
 0x3ad   : > { %v666_v33 = vpop.xlane.xlu1 %665 }
 0x3ae   : > { %v686_v34 = vadd.f32 %v1330_v18, %v666_v33 }
 0x3b0   : > { %703 = vst.msk [vmem:[%s1338_s28 + $0x78] sm:$0xff] %vm687_vm1, %v686_v34 }
 0x3b1   : > { %v662_v36 = vpop.xlane.xlu1 %661 }
 0x3b2   : > { %v684_v38 = vadd.f32 %v1330_v18, %v662_v36 }
 0x3b4   : > { %701 = vst.msk [vmem:[%s1338_s28 + $0x68] sm:$0xff] %vm687_vm1, %v684_v38 }
 0x3b5   : > { %v779_v39 = vpop.permute.xlu1 %778 }
 0x3b6   : > { %814 = vst.msk [vmem:[%s1345_s7 + $0x34] sm:$0xf] %vm800_vm2, %v779_v39 }
 0x3b9   : > { %v783_v40 = vpop.permute.xlu1 %782 }
 0x3ba   : > { %816 = vst.msk [vmem:[%s1345_s7 + $0x3c] sm:$0xf] %vm800_vm2, %v783_v40 }
 0x3bb PF: > { %s16_s18 = sadd.s32 1, %s1153_s18  }
 0x3bc   : > { %p13_p4 = scmp.ge.s32.totalorder %s16_s18, 4  }
 0x3be   :  { %15 = sbr.rel (!%p13_p4) target bundleno = 1 (0x1), region = 78 }

// kernel: tpu_custom_call.1
= control target key start
LH: loop header
LB: loop body
LE: loop exit
PB: predicated region body
PF: predicated region fallthrough
CT: control target
= control target key end

     0   :  { %s1186_s18 = smov 0   ;;  %s1462_s0 = inlined_call_operand.vmem [shape: f32[256,32], index: 0, kind: input, shape index: {}]   ;;  %s1463_s1 = inlined_call_operand.vmem [shape: bf16[32,128], index: 1, kind: input, shape index: {}]   ;;  %s1464_s2 = inlined_call_operand.vmem [shape: bf16[128,128], index: 2, kind: input, shape index: {}]   ;;  %s1465_s3 = inlined_call_operand.vmem [shape: f32[8,128], index: 3, kind: input, shape index: {}]   ;;  %s1466_s4 = inlined_call_operand.vmem [shape: f32[256,1], index: 4, kind: output, shape index: {0}]   ;;  %s1467_s5 = inlined_call_operand.vmem [shape: bf16[256,64], index: 5, kind: output, shape index: {1}]  }
   0x1 LB: > { %s907_s19 = sadd.s32 4294967295, %s1153_s18   ;;  %p911_p0 = scmp.ge.s32.totalorder %s1153_s18, 1  ;;  %s1153_s18 = sphi %s1186_s18, %s16_s18  }
   0x2   : > { %p191_p1 = scmp.lt.s32.totalorder %s1153_s18, 3 }
   0x4   : > { %p192_p2 = pnand %p911_p0, %p191_p1 }
   0x5   : > { %v1073_v0 = vld [vmem:[%s1463_s1] sm:$0xff] (!%p192_p2)   ;;  %s912_s22 = sshll.u32 (!%p192_p2), %s907_s19, 4  ;;  %v1074_v1 = vld [vmem:[%s1463_s1 + $0x8] sm:$0xff] (!%p192_p2)   ;;  %v1077_v4 = vld [vmem:[%s1464_s2 + $0x10] sm:$0xff] (!%p192_p2)   ;;  %vm288_vm0 = vcmask (!%p192_p2), 261120   ;;  %v272_v34 = vlaneseq (!%p192_p2)  ;;  %s1155_s24 = smov (!%p192_p2), 64  }
   0x6   : > { %195 = sbr.rel (%p192_p2) target bundleno = 955 (0x3bb), region = 36  ;;  %p225_p3 = scmp.lt.s32.totalorder (!%p192_p2), %s912_s22, 31  ;;  %996 = vmatprep.subr.bf16.mxu0 (!%p192_p2), %v1073_v0  ;;  %v1075_v2 = vld [vmem:[%s1464_s2] sm:$0xff] (!%p192_p2)   ;;  %v1076_v3 = vld [vmem:[%s1464_s2 + $0x8] sm:$0xff] (!%p192_p2)   ;;  %v1078_v16 = vld [vmem:[%s1464_s2 + $0x18] sm:$0xff] (!%p192_p2)   ;;  %vm687_vm1 = vcmask (!%p192_p2), 7168  }
   0x7   : > { %997 = vmatpush3.bf16.msra.mxu0 (!%p192_p2), %v1073_v0  ;;  %1048 = vmatprep.subr.bf16.mxu1 (!%p192_p2), %v1075_v2  ;;  %v1079_v26 = vld [vmem:[%s1464_s2 + $0x20] sm:$0xff] (!%p192_p2)   ;;  %v1080_v31 = vld [vmem:[%s1464_s2 + $0x28] sm:$0xff] (!%p192_p2)   ;;  %v1081_v32 = vld [vmem:[%s1464_s2 + $0x30] sm:$0xff] (!%p192_p2)   ;;  %v1258_v35 = vshrl.u32 (!%p192_p2), %v272_v34, 7  ;;  %vm800_vm2 = vcmask (!%p192_p2), 519168  }
   0x8   : > { %998 = vmatprep.subr.bf16.mxu0 (!%p192_p2), %v1074_v1  ;;  %1056 = vmatpush3.bf16.msra.mxu1 (!%p192_p2), %v1075_v2  ;;  %v1082_v33 = vld [vmem:[%s1464_s2 + $0x38] sm:$0xff] (!%p192_p2)   ;;  %v1264_v37 = vld [vmem:[%s1465_s3] sm:$0xff] (!%p192_p2) }
   0x9   : > { %1049 = vmatprep.subr.bf16.mxu1 (!%p192_p2), %v1076_v3  ;;  %v274_v36 = vsub.s32 (!%p192_p2), 0, %v1258_v35 }
   0xb   : > { %999 = vmatpush3.bf16.msra.mxu0 (!%p192_p2), %v1074_v1  ;;  %v1267_v38 = vrot.slane (!%p192_p2), %v1264_v37, %v274_v36 }
   0xc   : > { %1016 = vmatprep.subr.bf16.mxu0 (!%p192_p2), %v1075_v2  ;;  %1057 = vmatpush3.bf16.msra.mxu1 (!%p192_p2), %v1076_v3 }
   0xd   : > { %s1469_s22 = smov (!%p225_p3, %s912_s22), 31  ;;  %1050 = vmatprep.subr.bf16.mxu1 %v1077_v4 }
   0xe   : > { %s913_s29 = sshll.u32 %s1469_s22, 3  ;;  %s917_s25 = sshll.u32 %s1469_s22, 2 }
   0xf   : > { %s1214_s7 = scalar_lea.vmem %s1462_s0, %s913_s29  ;;  %s1338_s28 = scalar_lea.vmem %s1466_s4, %s913_s29 }
  0x10   : > { %v244_v5 = vld [vmem:[%s1214_s7] sm:$0xff]  ;;  %v245_v6 = vld [vmem:[%s1214_s7 + $0x8] sm:$0xff]  ;;  %v246_v7 = vld [vmem:[%s1214_s7 + $0x10] sm:$0xff]  ;;  %1058 = vmatpush3.bf16.msra.mxu1 %v1077_v4 }
  0x11   : > { %v260_v8 = vpack.c.bf16 %v245_v6, %v244_v5  ;;  %v247_v9 = vld [vmem:[%s1214_s7 + $0x18] sm:$0xff]  ;;  %v248_v10 = vld [vmem:[%s1214_s7 + $0x20] sm:$0xff]  ;;  %v249_v11 = vld [vmem:[%s1214_s7 + $0x28] sm:$0xff]  ;;  %1051 = vmatprep.subr.bf16.mxu1 %v1078_v16 }
  0x12   : > { %v261_v12 = vpack.c.bf16 %v247_v9, %v246_v7  ;;  %v262_v13 = vpack.c.bf16 %v249_v11, %v248_v10  ;;  %v250_v14 = vld [vmem:[%s1214_s7 + $0x30] sm:$0xff]  ;;  %v251_v15 = vld [vmem:[%s1214_s7 + $0x38] sm:$0xff]  ;;  %v252_v17 = vld [vmem:[%s1214_s7 + $0x40] sm:$0xff] }
  0x13   : > { %1000 = vmatprep.mubr.msk.bf16.mxu0 %vm288_vm0, %v260_v8  ;;  %v253_v18 = vld [vmem:[%s1214_s7 + $0x48] sm:$0xff]  ;;  %v263_v19 = vpack.c.bf16 %v251_v15, %v250_v14  ;;  %v254_v21 = vld [vmem:[%s1214_s7 + $0x50] sm:$0xff]  ;;  %v255_v22 = vld [vmem:[%s1214_s7 + $0x58] sm:$0xff] }
  0x14   : > { %1001 = vmatmul.mubr.msk.bf16.vlgmr.msra.gmra.mrb[0].mxu0 %vm288_vm0, %v261_v12  ;;  %v264_v20 = vpack.c.bf16 %v253_v18, %v252_v17  ;;  %1059 = vmatpush3.bf16.msra.mxu1 %v1078_v16  ;;  %v265_v23 = vpack.c.bf16 %v255_v22, %v254_v21  ;;  %v256_v24 = vld [vmem:[%s1214_s7 + $0x60] sm:$0xff]  ;;  %v257_v25 = vld [vmem:[%s1214_s7 + $0x68] sm:$0xff]  ;;  %v258_v28 = vld [vmem:[%s1214_s7 + $0x70] sm:$0xff] }
  0x15   : > { %1004 = vmatprep.mubr.msk.bf16.mxu0 %vm288_vm0, %v262_v13  ;;  %1017 = vmatpush3.bf16.msra.mxu0 %v1075_v2  ;;  %v266_v27 = vpack.c.bf16 %v257_v25, %v256_v24  ;;  %v259_v29 = vld [vmem:[%s1214_s7 + $0x78] sm:$0xff]  ;;  %s1345_s7 = scalar_lea.vmem %s1467_s5, %s917_s25 }
  0x16   : > { %1018 = vmatprep.subr.bf16.mxu0 %v1076_v3  ;;  %v267_v30 = vpack.c.bf16 %v259_v29, %v258_v28  ;;  %1052 = vmatprep.subr.bf16.mxu1 %v1079_v26 }
  0x18   : > { %1060 = vmatpush3.bf16.msra.mxu1 %v1079_v26 }
  0x19   : > { %1019 = vmatpush3.bf16.msra.mxu0 %v1076_v3  ;;  %1053 = vmatprep.subr.bf16.mxu1 %v1080_v31 }
  0x1a   : > { %1020 = vmatprep.subr.bf16.mxu0 %v1077_v4 }
  0x1c   : > { %1005 = vmatmul.mubr.msk.bf16.gmra.mrb[4].mxu0 %vm288_vm0, %v263_v19  ;;  %1061 = vmatpush3.bf16.msra.mxu1 %v1080_v31 }
  0x1d   : > { %1008 = vmatprep.mubr.msk.bf16.mxu0 %vm288_vm0, %v264_v20  ;;  %1021 = vmatpush3.bf16.msra.mxu0 %v1077_v4 }
  0x1e   : > { %1022 = vmatprep.subr.bf16.mxu0 %v1078_v16  ;;  %1054 = vmatprep.subr.bf16.mxu1 %v1081_v32 }
  0x20   : > { %1062 = vmatpush3.bf16.msra.mxu1 %v1081_v32 }
  0x21   : > { %1023 = vmatpush3.bf16.msra.mxu0 %v1078_v16  ;;  %1055 = vmatprep.subr.bf16.mxu1 %v1082_v33 }
  0x22   : > { %1024 = vmatprep.subr.bf16.mxu0 %v1079_v26 }
  0x24   : > { %1009 = vmatmul.mubr.msk.bf16.gmra.mrb[8].mxu0 %vm288_vm0, %v265_v23  ;;  %1063 = vmatpush3.bf16.msra.mxu1 %v1082_v33 }
  0x25   : > { %1012 = vmatprep.mubr.msk.bf16.mxu0 %vm288_vm0, %v266_v27  ;;  %1025 = vmatpush3.bf16.msra.mxu0 %v1079_v26 }
  0x26   : > { %1026 = vmatprep.subr.bf16.mxu0 %v1080_v31 }
  0x29   : > { %1027 = vmatpush3.bf16.msra.mxu0 %v1080_v31  ;;  %v452_v31 = vsub.s32 1, %v1258_v35 }
  0x2a   : > { %1028 = vmatprep.subr.bf16.mxu0 %v1081_v32 }
  0x2c   : > { %1013 = vmatmul.mubr.msk.bf16.gmra.mrb[12].mxu0 %vm288_vm0, %v267_v30 }
  0x2d   : > { %1029 = vmatpush3.bf16.msra.mxu0 %v1081_v32  ;;  %v1287_v32 = vrot.slane %v1264_v37, %v452_v31 }
  0x2e   : > { %1030 = vmatprep.subr.bf16.mxu0 %v1082_v33 }
  0x31   : > { %1031 = vmatpush3.bf16.msra.mxu0 %v1082_v33 }
  0xe7   : > { %v1002_v39 = vpop.f32.mrb[0].mxu0 }
  0xe8   : > { %v356_v40 = vadd.f32 %v1002_v39, %v1267_v38  ;;  %v347_v41 = vpop.f32.mrb[1].mxu0 }
  0xe9   : > { %v348_v42 = vadd.f32 %v347_v41, %v1267_v38  ;;  %v1003_v43 = vpop.f32.mrb[2].mxu0  ;;  %v617_v41 = vsub.s32 2, %v1258_v35 }
  0xea   : > { %1083 = vtanh.f32 %v356_v40  ;;  %v359_v44 = vadd.f32 %v1003_v43, %v1267_v38  ;;  %v350_v45 = vpop.f32.mrb[3].mxu0 }
  0xeb   : > { %1085 = vtanh.f32 %v348_v42  ;;  %v351_v46 = vadd.f32 %v350_v45, %v1267_v38 }
  0xec   : > { %1087 = vtanh.f32 %v359_v44  ;;  %v1293_v44 = vrot.slane %v1264_v37, %v617_v41 }
  0xed   : > { %1089 = vtanh.f32 %v351_v46 }
  0xef   : > { %v1006_v47 = vpop.f32.mrb[4].mxu0 }
  0xf0   : > { %v372_v48 = vadd.f32 %v1006_v47, %v1267_v38  ;;  %v363_v49 = vpop.f32.mrb[5].mxu0 }
  0xf1   : > { %v364_v50 = vadd.f32 %v363_v49, %v1267_v38  ;;  %v1007_v51 = vpop.f32.mrb[6].mxu0 }
  0xf2   : > { %1091 = vtanh.f32 %v372_v48  ;;  %v375_v52 = vadd.f32 %v1007_v51, %v1267_v38  ;;  %v366_v53 = vpop.f32.mrb[7].mxu0 }
  0xf3   : > { %1093 = vtanh.f32 %v364_v50  ;;  %v367_v54 = vadd.f32 %v366_v53, %v1267_v38 }
  0xf4   : > { %v1084_v55 = vpop.eup %1083  ;;  %1095 = vtanh.f32 %v375_v52 }
  0xf5   : > { %v1086_v56 = vpop.eup %1085  ;;  %1097 = vtanh.f32 %v367_v54 }
  0xf6   : > { %v1088_v57 = vpop.eup %1087 }
  0xf7   : > { %v1090_v58 = vpop.eup %1089  ;;  %v427_v59 = vpack.c.bf16 %v1088_v57, %v1084_v55  ;;  %v1010_v60 = vpop.f32.mrb[8].mxu0 }
  0xf8   : > { %v426_v61 = vpack.c.bf16 %v1090_v58, %v1086_v56  ;;  %v388_v62 = vadd.f32 %v1010_v60, %v1267_v38  ;;  %v379_v63 = vpop.f32.mrb[9].mxu0 }
  0xf9   : > { %v380_v0 = vadd.f32 %v379_v63, %v1267_v38  ;;  %v1011_v1 = vpop.f32.mrb[10].mxu0 }
  0xfa   : > { %1032 = vmatprep.mubr.bf16.mxu0 %v426_v61  ;;  %1099 = vtanh.f32 %v388_v62  ;;  %v391_v2 = vadd.f32 %v1011_v1, %v1267_v38  ;;  %v382_v3 = vpop.f32.mrb[11].mxu0 }
  0xfb   : > { %1033 = vmatmul.mubr.bf16.vlgmr.msra.gmra.mrb[16].mxu0 %v427_v59  ;;  %1101 = vtanh.f32 %v380_v0  ;;  %v383_v4 = vadd.f32 %v382_v3, %v1267_v38 }
  0xfc   : > { %v1092_v5 = vpop.eup %1091  ;;  %1103 = vtanh.f32 %v391_v2 }
  0xfd   : > { %v1094_v6 = vpop.eup %1093  ;;  %1105 = vtanh.f32 %v383_v4 }
  0xfe   : > { %v1096_v7 = vpop.eup %1095 }
  0xff   : > { %v1098_v8 = vpop.eup %1097  ;;  %v429_v9 = vpack.c.bf16 %v1096_v7, %v1092_v5  ;;  %v1014_v17 = vpop.f32.mrb[12].mxu0 }
 0x100   : > { %v428_v10 = vpack.c.bf16 %v1098_v8, %v1094_v6  ;;  %v404_v18 = vadd.f32 %v1014_v17, %v1267_v38  ;;  %v395_v19 = vpop.f32.mrb[13].mxu0  ;;  %v669_v17 = vsub.s32 3, %v1258_v35 }
 0x101   : > { %v396_v20 = vadd.f32 %v395_v19, %v1267_v38  ;;  %v1015_v21 = vpop.f32.mrb[14].mxu0 }
 0x102   : > { %1036 = vmatprep.mubr.bf16.mxu1 %v428_v10  ;;  %1107 = vtanh.f32 %v404_v18  ;;  %v407_v22 = vadd.f32 %v1015_v21, %v1267_v38  ;;  %v398_v23 = vpop.f32.mrb[15].mxu0  ;;  %v1330_v18 = vrot.slane %v1264_v37, %v669_v17 }
 0x103   : > { %1037 = vmatmul.mubr.bf16.vlgmr.msra.gmra.mrb[0].mxu1 %v429_v9  ;;  %1109 = vtanh.f32 %v396_v20  ;;  %v399_v24 = vadd.f32 %v398_v23, %v1267_v38 }
 0x104   : > { %v1100_v11 = vpop.eup %1099  ;;  %1111 = vtanh.f32 %v407_v22 }
 0x105   : > { %v1102_v12 = vpop.eup %1101  ;;  %1113 = vtanh.f32 %v399_v24 }
 0x106   : > { %v1104_v13 = vpop.eup %1103 }
 0x107   : > { %v1106_v14 = vpop.eup %1105  ;;  %v431_v15 = vpack.c.bf16 %v1104_v13, %v1100_v11 }
 0x108   : > { %v430_v16 = vpack.c.bf16 %v1106_v14, %v1102_v12 }
 0x10a   : > { %1040 = vmatprep.mubr.bf16.mxu1 %v430_v16 }
 0x10b   : > { %1041 = vmatmul.mubr.bf16.gmra.mrb[4].mxu1 %v431_v15 }
 0x10c   : > { %v1108_v25 = vpop.eup %1107 }
 0x10d   : > { %v1110_v26 = vpop.eup %1109 }
 0x10e   : > { %v1112_v27 = vpop.eup %1111 }
 0x10f   : > { %v1114_v28 = vpop.eup %1113  ;;  %v433_v30 = vpack.c.bf16 %v1112_v27, %v1108_v25 }
 0x110   : > { %v432_v29 = vpack.c.bf16 %v1114_v28, %v1110_v26 }
 0x112   : > { %1044 = vmatprep.mubr.bf16.mxu1 %v432_v29 }
 0x113   : > { %1045 = vmatmul.mubr.bf16.gmra.mrb[8].mxu1 %v433_v30 }
 0x1ce   : > { %v1034_v33 = vpop.f32.mrb[16].mxu0 }
 0x1cf   : > { %v545_v34 = vadd.f32 %v1034_v33, %v1287_v32  ;;  %v536_v36 = vpop.f32.mrb[17].mxu0 }
 0x1d0   : > { %v537_v38 = vadd.f32 %v536_v36, %v1287_v32  ;;  %v1035_v39 = vpop.f32.mrb[18].mxu0 }
 0x1d1   : > { %1115 = vtanh.f32 %v545_v34  ;;  %v539_v40 = vpop.f32.mrb[19].mxu0  ;;  %v548_v54 = vadd.f32 %v1035_v39, %v1287_v32 }
 0x1d2   : > { %1117 = vtanh.f32 %v537_v38  ;;  %v540_v55 = vadd.f32 %v539_v40, %v1287_v32 }
 0x1d3   : > { %1119 = vtanh.f32 %v548_v54 }
 0x1d4   : > { %1121 = vtanh.f32 %v540_v55 }
 0x1d6   : > { %v1038_v42 = vpop.f32.mrb[0].mxu1 }
 0x1d7   : > { %v552_v43 = vpop.f32.mrb[1].mxu1  ;;  %v561_v56 = vadd.f32 %v1038_v42, %v1287_v32 }
 0x1d8   : > { %v1039_v45 = vpop.f32.mrb[2].mxu1  ;;  %v553_v10 = vadd.f32 %v552_v43, %v1287_v32 }
 0x1d9   : > { %v1295_v46 = vpop.f32.mrb[3].mxu1  ;;  %1123 = vtanh.f32 %v561_v56  ;;  %v564_v9 = vadd.f32 %v1039_v45, %v1287_v32 }
 0x1da   : > { %v556_v37 = vadd.f32 %v1295_v46, %v1287_v32 }
 0x1db   : > { %v1116_v47 = vpop.eup %1115  ;;  %1125 = vtanh.f32 %v564_v9 }
 0x1dc   : > { %v1118_v48 = vpop.eup %1117  ;;  %v621_v49 = vmul.f32 %v1116_v47, %v1293_v44  ;;  %v956_v51 = vpack.c.bf16 %v1116_v47, %v1116_v47  ;;  %1127 = vtanh.f32 %v553_v10 }
 0x1dd   : > { %v619_v50 = vmul.f32 %v1118_v48, %v1293_v44  ;;  %v954_v53 = vpack.c.bf16 %v1118_v48, %v1118_v48  ;;  %v1120_v57 = vpop.eup %1119 }
 0x1de   : > { %639 = vadd.xlane.f32.xlu1 %v621_v49  ;;  %v1042_v52 = vpop.f32.mrb[4].mxu1  ;;  %v1122_v58 = vpop.eup %1121  ;;  %v622_v60 = vmul.f32 %v1120_v57, %v1293_v44  ;;  %v957_v2 = vpack.c.bf16 %v1120_v57, %v1120_v57 }
 0x1df   : > { %635 = vadd.xlane.f32.xlu0 %v619_v50  ;;  %v620_v61 = vmul.f32 %v1122_v58, %v1293_v44  ;;  %v1307_v63 = vpop.f32.mrb[5].mxu1  ;;  %v955_v3 = vpack.c.bf16 %v1122_v58, %v1122_v58  ;;  %v577_v35 = vadd.f32 %v1042_v52, %v1287_v32 }
 0x1e0   : > { %v1043_v0 = vpop.f32.mrb[6].mxu1  ;;  %v569_v39 = vadd.f32 %v1307_v63, %v1287_v32 }
 0x1e1   : > { %v1309_v1 = vpop.f32.mrb[7].mxu1  ;;  %1129 = vtanh.f32 %v577_v35  ;;  %v580_v38 = vadd.f32 %v1043_v0, %v1287_v32 }
 0x1e2   : > { %1131 = vtanh.f32 %v556_v37  ;;  %v572_v52 = vadd.f32 %v1309_v1, %v1287_v32 }
 0x1e3   : > { %v1124_v59 = vpop.eup %1123  ;;  %1133 = vtanh.f32 %v580_v38 }
 0x1e4   : > { %v625_v62 = vmul.f32 %v1124_v59, %v1293_v44  ;;  %v960_v7 = vpack.c.bf16 %v1124_v59, %v1124_v59  ;;  %1135 = vtanh.f32 %v569_v39 }
 0x1e5   : > { %v1126_v11 = vpop.eup %1125  ;;  %1137 = vtanh.f32 %v572_v52 }
 0x1e6   : > { %v1312_v4 = vpop.f32.mrb[8].mxu1  ;;  %v1128_v12 = vpop.eup %1127  ;;  %v626_v13 = vmul.f32 %v1126_v11, %v1293_v44  ;;  %v961_v15 = vpack.c.bf16 %v1126_v11, %v1126_v11 }
 0x1e7   : > { %v1315_v5 = vpop.f32.mrb[9].mxu1  ;;  %v623_v14 = vmul.f32 %v1128_v12, %v1293_v44  ;;  %v958_v16 = vpack.c.bf16 %v1128_v12, %v1128_v12 }
 0x1e8   : > { %v1317_v6 = vpop.f32.mrb[10].mxu1  ;;  %v585_v58 = vadd.f32 %v1315_v5, %v1287_v32 }
 0x1e9   : > { %v1319_v8 = vpop.f32.mrb[11].mxu1 }
 0x1eb   : > { %v1130_v25 = vpop.eup %1129 }
 0x1ec   : > { %v1132_v26 = vpop.eup %1131  ;;  %v629_v27 = vmul.f32 %v1130_v25, %v1293_v44  ;;  %v964_v30 = vpack.c.bf16 %v1130_v25, %v1130_v25 }
 0x1ed   : > { %v624_v28 = vmul.f32 %v1132_v26, %v1293_v44  ;;  %v959_v29 = vpack.c.bf16 %v1132_v26, %v1132_v26  ;;  %v1134_v46 = vpop.eup %1133 }
 0x1ee   : > { %v1136_v47 = vpop.eup %1135  ;;  %v630_v48 = vmul.f32 %v1134_v46, %v1293_v44  ;;  %v965_v50 = vpack.c.bf16 %v1134_v46, %v1134_v46 }
 0x1ef   : > { %756 = vrot.lane.b32.xlu1 %v956_v51, %s1155_s24  ;;  %v627_v49 = vmul.f32 %v1136_v47, %v1293_v44  ;;  %v962_v51 = vpack.c.bf16 %v1136_v47, %v1136_v47 }
 0x1f5   : > { %752 = vrot.lane.b32.xlu0 %v954_v53, %s1155_s24  ;;  %v593_v53 = vadd.f32 %v1312_v4, %v1287_v32 }
 0x1f7   : > { %1139 = vtanh.f32 %v593_v53 }
 0x1f8   : > { %1141 = vtanh.f32 %v585_v58 }
 0x213   : > { %641 = vadd.xlane.f32.xlu1 %v622_v60 }
 0x214   : > { %637 = vadd.xlane.f32.xlu0 %v620_v61  ;;  %v1138_v61 = vpop.eup %1137 }
 0x215   : > { %v628_v63 = vmul.f32 %v1138_v61, %v1293_v44 }
 0x218   : > { %647 = vadd.xlane.f32.xlu0 %v625_v62  ;;  %v1140_v62 = vpop.eup %1139 }
 0x219   : > { %v633_v0 = vmul.f32 %v1140_v62, %v1293_v44  ;;  %v1142_v1 = vpop.eup %1141  ;;  %v968_v5 = vpack.c.bf16 %v1140_v62, %v1140_v62 }
 0x21a   : > { %v966_v4 = vpack.c.bf16 %v1142_v1, %v1142_v1 }
 0x224   : > { %758 = vrot.lane.b32.xlu1 %v957_v2, %s1155_s24  ;;  %v631_v2 = vmul.f32 %v1142_v1, %v1293_v44 }
 0x228   : > { %754 = vrot.lane.b32.xlu1 %v955_v3, %s1155_s24  ;;  %v963_v3 = vpack.c.bf16 %v1138_v61, %v1138_v61 }
 0x22e   : > { %764 = vrot.lane.b32.xlu0 %v960_v7, %s1155_s24  ;;  %v596_v7 = vadd.f32 %v1317_v6, %v1287_v32 }
 0x230   : > { %1143 = vtanh.f32 %v596_v7 }
 0x23a   : > { %v1144_v6 = vpop.eup %1143 }
 0x24c   : > { %649 = vadd.xlane.f32.xlu1 %v626_v13  ;;  %v588_v13 = vadd.f32 %v1319_v8, %v1287_v32 }
 0x24d   : > { %643 = vadd.xlane.f32.xlu0 %v623_v14 }
 0x24e   : > { %1145 = vtanh.f32 %v588_v13 }
 0x258   : > { %v1146_v17 = vpop.eup %1145 }
 0x259   : > { %v632_v32 = vmul.f32 %v1146_v17, %v1293_v44  ;;  %v967_v8 = vpack.c.bf16 %v1146_v17, %v1146_v17 }
 0x25d   : > { %766 = vrot.lane.b32.xlu1 %v961_v15, %s1155_s24 }
 0x263   : > { %760 = vrot.lane.b32.xlu0 %v958_v16, %s1155_s24  ;;  %v634_v16 = vmul.f32 %v1144_v6, %v1293_v44 }
 0x26b   : > { %v640_v19 = vpop.xlane.xlu1 %639 }
 0x26c   : > { %v673_v20 = vadd.f32 %v1330_v18, %v640_v19  ;;  %v636_v21 = vpop.xlane.xlu0 %635  ;;  %v969_v19 = vpack.c.bf16 %v1144_v6, %v1144_v6 }
 0x26d   : > { %v671_v22 = vadd.f32 %v1330_v18, %v636_v21 }
 0x26e   : > { %690 = vst.msk [vmem:[%s1338_s28 + $0x10] sm:$0xff] %vm687_vm1, %v673_v20 }
 0x26f   : > { %688 = vst.msk [vmem:[%s1338_s28] sm:$0xff] %vm687_vm1, %v671_v22  ;;  %v757_v23 = vpop.permute.xlu1 %756 }
 0x270   : > { %803 = vst.msk [vmem:[%s1345_s7 + $0x8] sm:$0xf] %vm800_vm2, %v757_v23  ;;  %v753_v24 = vpop.permute.xlu0 %752 }
 0x271   : > { %801 = vst.msk [vmem:[%s1345_s7] sm:$0xf] %vm800_vm2, %v753_v24 }
 0x281   : > { %645 = vadd.xlane.f32.xlu1 %v624_v28 }
 0x282   : > { %655 = vadd.xlane.f32.xlu0 %v629_v27 }
 0x292   : > { %762 = vrot.lane.b32.xlu1 %v959_v29, %s1155_s24 }
 0x298   : > { %772 = vrot.lane.b32.xlu0 %v964_v30, %s1155_s24 }
 0x2a0   : > { %v642_v31 = vpop.xlane.xlu1 %641 }
 0x2a1   : > { %v674_v33 = vadd.f32 %v1330_v18, %v642_v31  ;;  %v638_v34 = vpop.xlane.xlu0 %637 }
 0x2a2   : > { %v672_v36 = vadd.f32 %v1330_v18, %v638_v34 }
 0x2a3   : > { %691 = vst.msk [vmem:[%s1338_s28 + $0x18] sm:$0xff] %vm687_vm1, %v674_v33 }
 0x2a4   : > { %689 = vst.msk [vmem:[%s1338_s28 + $0x8] sm:$0xff] %vm687_vm1, %v672_v36  ;;  %v759_v40 = vpop.permute.xlu1 %758 }
 0x2a5   : > { %804 = vst.msk [vmem:[%s1345_s7 + $0xc] sm:$0xf] %vm800_vm2, %v759_v40  ;;  %v648_v41 = vpop.xlane.xlu0 %647 }
 0x2a6   : > { %v677_v42 = vadd.f32 %v1330_v18, %v648_v41 }
 0x2a8   : > { %v755_v43 = vpop.permute.xlu1 %754  ;;  %694 = vst.msk [vmem:[%s1338_s28 + $0x30] sm:$0xff] %vm687_vm1, %v677_v42 }
 0x2a9   : > { %802 = vst.msk [vmem:[%s1345_s7 + $0x4] sm:$0xf] %vm800_vm2, %v755_v43  ;;  %v765_v45 = vpop.permute.xlu0 %764 }
 0x2aa   : > { %807 = vst.msk [vmem:[%s1345_s7 + $0x18] sm:$0xf] %vm800_vm2, %v765_v45 }
 0x2b6   : > { %657 = vadd.xlane.f32.xlu1 %v630_v48 }
 0x2b7   : > { %651 = vadd.xlane.f32.xlu0 %v627_v49 }
 0x2c7   : > { %774 = vrot.lane.b32.xlu1 %v965_v50, %s1155_s24 }
 0x2cd   : > { %768 = vrot.lane.b32.xlu0 %v962_v51, %s1155_s24 }
 0x2d9   : > { %v650_v54 = vpop.xlane.xlu1 %649 }
 0x2da   : > { %v678_v55 = vadd.f32 %v1330_v18, %v650_v54  ;;  %v644_v56 = vpop.xlane.xlu0 %643 }
 0x2db   : > { %v675_v57 = vadd.f32 %v1330_v18, %v644_v56 }
 0x2dc   : > { %695 = vst.msk [vmem:[%s1338_s28 + $0x38] sm:$0xff] %vm687_vm1, %v678_v55 }
 0x2dd   : > { %692 = vst.msk [vmem:[%s1338_s28 + $0x20] sm:$0xff] %vm687_vm1, %v675_v57  ;;  %v767_v59 = vpop.permute.xlu1 %766 }
 0x2de   : > { %808 = vst.msk [vmem:[%s1345_s7 + $0x1c] sm:$0xf] %vm800_vm2, %v767_v59  ;;  %v761_v60 = vpop.permute.xlu0 %760 }
 0x2df   : > { %805 = vst.msk [vmem:[%s1345_s7 + $0x10] sm:$0xf] %vm800_vm2, %v761_v60 }
 0x2eb   : > { %653 = vadd.xlane.f32.xlu1 %v628_v63 }
 0x2ec   : > { %663 = vadd.xlane.f32.xlu0 %v633_v0 }
 0x2f0   : > { %659 = vadd.xlane.f32.xlu0 %v631_v2 }
 0x2fc   : > { %770 = vrot.lane.b32.xlu1 %v963_v3, %s1155_s24 }
 0x306   : > { %776 = vrot.lane.b32.xlu0 %v966_v4, %s1155_s24 }
 0x30a   : > { %780 = vrot.lane.b32.xlu0 %v968_v5, %s1155_s24 }
 0x30e   : > { %v646_v9 = vpop.xlane.xlu1 %645 }
 0x30f   : > { %v676_v10 = vadd.f32 %v1330_v18, %v646_v9  ;;  %v656_v11 = vpop.xlane.xlu0 %655 }
 0x310   : > { %v681_v12 = vadd.f32 %v1330_v18, %v656_v11 }
 0x311   : > { %693 = vst.msk [vmem:[%s1338_s28 + $0x28] sm:$0xff] %vm687_vm1, %v676_v10 }
 0x312   : > { %v763_v14 = vpop.permute.xlu1 %762  ;;  %698 = vst.msk [vmem:[%s1338_s28 + $0x50] sm:$0xff] %vm687_vm1, %v681_v12 }
 0x313   : > { %806 = vst.msk [vmem:[%s1345_s7 + $0x14] sm:$0xf] %vm800_vm2, %v763_v14  ;;  %v773_v15 = vpop.permute.xlu0 %772 }
 0x314   : > { %811 = vst.msk [vmem:[%s1345_s7 + $0x28] sm:$0xf] %vm800_vm2, %v773_v15 }
 0x320   : > { %665 = vadd.xlane.f32.xlu1 %v634_v16 }
 0x324   : > { %661 = vadd.xlane.f32.xlu1 %v632_v32 }
 0x335   : > { %778 = vrot.lane.b32.xlu1 %v967_v8, %s1155_s24 }
 0x339   : > { %782 = vrot.lane.b32.xlu1 %v969_v19, %s1155_s24 }
 0x343   : > { %v658_v20 = vpop.xlane.xlu1 %657 }
 0x344   : > { %v682_v21 = vadd.f32 %v1330_v18, %v658_v20  ;;  %v652_v22 = vpop.xlane.xlu0 %651 }
 0x345   : > { %v679_v35 = vadd.f32 %v1330_v18, %v652_v22 }
 0x346   : > { %699 = vst.msk [vmem:[%s1338_s28 + $0x58] sm:$0xff] %vm687_vm1, %v682_v21 }
 0x347   : > { %696 = vst.msk [vmem:[%s1338_s28 + $0x40] sm:$0xff] %vm687_vm1, %v679_v35  ;;  %v775_v44 = vpop.permute.xlu1 %774 }
 0x348   : > { %812 = vst.msk [vmem:[%s1345_s7 + $0x2c] sm:$0xf] %vm800_vm2, %v775_v44  ;;  %v769_v37 = vpop.permute.xlu0 %768 }
 0x349   : > { %809 = vst.msk [vmem:[%s1345_s7 + $0x20] sm:$0xf] %vm800_vm2, %v769_v37 }
 0x378   : > { %v654_v23 = vpop.xlane.xlu1 %653 }
 0x379   : > { %v680_v24 = vadd.f32 %v1330_v18, %v654_v23  ;;  %v664_v25 = vpop.xlane.xlu0 %663 }
 0x37a   : > { %v685_v26 = vadd.f32 %v1330_v18, %v664_v25 }
 0x37b   : > { %697 = vst.msk [vmem:[%s1338_s28 + $0x48] sm:$0xff] %vm687_vm1, %v680_v24 }
 0x37c   : > { %702 = vst.msk [vmem:[%s1338_s28 + $0x70] sm:$0xff] %vm687_vm1, %v685_v26  ;;  %v771_v27 = vpop.permute.xlu1 %770 }
 0x37d   : > { %810 = vst.msk [vmem:[%s1345_s7 + $0x24] sm:$0xf] %vm800_vm2, %v771_v27  ;;  %v660_v28 = vpop.xlane.xlu0 %659 }
 0x37e   : > { %v683_v29 = vadd.f32 %v1330_v18, %v660_v28 }
 0x380   : > { %700 = vst.msk [vmem:[%s1338_s28 + $0x60] sm:$0xff] %vm687_vm1, %v683_v29 }
 0x381   : > { %v777_v30 = vpop.permute.xlu0 %776 }
 0x382   : > { %813 = vst.msk [vmem:[%s1345_s7 + $0x30] sm:$0xf] %vm800_vm2, %v777_v30 }
 0x385   : > { %v781_v31 = vpop.permute.xlu0 %780 }
 0x386   : > { %815 = vst.msk [vmem:[%s1345_s7 + $0x38] sm:$0xf] %vm800_vm2, %v781_v31 }
 0x3ad   : > { %v666_v33 = vpop.xlane.xlu1 %665 }
 0x3ae   : > { %v686_v34 = vadd.f32 %v1330_v18, %v666_v33 }
 0x3b0   : > { %703 = vst.msk [vmem:[%s1338_s28 + $0x78] sm:$0xff] %vm687_vm1, %v686_v34 }
 0x3b1   : > { %v662_v36 = vpop.xlane.xlu1 %661 }
 0x3b2   : > { %v684_v38 = vadd.f32 %v1330_v18, %v662_v36 }
 0x3b4   : > { %701 = vst.msk [vmem:[%s1338_s28 + $0x68] sm:$0xff] %vm687_vm1, %v684_v38 }
 0x3b5   : > { %v779_v39 = vpop.permute.xlu1 %778 }
 0x3b6   : > { %814 = vst.msk [vmem:[%s1345_s7 + $0x34] sm:$0xf] %vm800_vm2, %v779_v39 }
 0x3b9   : > { %v783_v40 = vpop.permute.xlu1 %782 }
 0x3ba   : > { %816 = vst.msk [vmem:[%s1345_s7 + $0x3c] sm:$0xf] %vm800_vm2, %v783_v40 }
 0x3bb PF: > { %s16_s18 = sadd.s32 1, %s1153_s18  }
 0x3bc   : > { %p13_p4 = scmp.ge.s32.totalorder %s16_s18, 4  }
 0x3be   :  { %15 = sbr.rel (!%p13_p4) target bundleno = 1 (0x1), region = 78 }

</bundles_post_ra>
